<compile_context>
chip_gen: v7x
topology: tpu7x:2x2x1
jax: 0.10.0
libtpu: 0.0.40
codegen_flags: <defaults>
</compile_context>

<pallas_src>
import functools

import numpy as np
import jax
import jax.numpy as jnp
from jax.experimental import pallas as pl
from jax.experimental.pallas import tpu as pltpu

BN_EPS = 1e-5


# --------------------------------------------------------------------------
# Host-side (numpy) construction of the small constant operator matrices that
# let the whole conv block run as plain 2-D MXU matmuls inside one kernel.
# --------------------------------------------------------------------------
def _banded_conv_mats(w_hwio, w_spatial):
    """(3,3,Cin,Cout) HWIO weights -> (3, W*Cin, W*Cout) banded matrices.

    B[dy, x_in*Cin+ci, x_out*Cout+co] = w[dy, x_in-x_out+1, ci, co] for
    |x_in - x_out| <= 1 (else 0), so a single matmul implements the kw
    (width) dimension of the 3x3 conv including the width zero-padding.
    """
    w = np.asarray(w_hwio, np.float32)                 # (3, 3, cin, cout)
    _, _, cin, cout = w.shape
    xi = np.arange(w_spatial)[:, None]
    xo = np.arange(w_spatial)[None, :]
    dx = xi - xo + 1                                   # (W, W)
    valid = (dx >= 0) & (dx <= 2)
    gathered = w[:, np.clip(dx, 0, 2)]                 # (3, W, W, cin, cout)
    gathered = np.where(valid[None, :, :, None, None], gathered, 0.0)
    banded = gathered.transpose(0, 1, 3, 2, 4).reshape(
        3, w_spatial * cin, w_spatial * cout)
    return jnp.asarray(banded, dtype=jnp.float32)


def _row_shift_mats(n, h):
    """(3, n*h, n*h) 0/1 matrices implementing the kh (height) taps w/ zero pad."""
    s = np.zeros((3, n * h, n * h), np.float32)
    for dy in range(3):
        for b in range(n):
            for y in range(h):
                yin = y + dy - 1
                if 0 <= yin < h:
                    s[dy, b * h + y, b * h + yin] = 1.0
    return jnp.asarray(s)


def _row_pool_mats(n, h):
    """(2, n*h//2, n*h) row-decimation matrices for the 2x2 maxpool (H dir)."""
    d = np.zeros((2, n * (h // 2), n * h), np.float32)
    for ph in range(2):
        for b in range(n):
            for y in range(h // 2):
                d[ph, b * (h // 2) + y, b * h + 2 * y + ph] = 1.0
    return jnp.asarray(d)


def _lane_pool_mats(w, c):
    """(2, w*c, (w//2)*c) lane-decimation matrices for the 2x2 maxpool (W dir)."""
    e = np.zeros((2, w * c, (w // 2) * c), np.float32)
    for ph in range(2):
        for x in range(w // 2):
            for ch in range(c):
                e[ph, (2 * x + ph) * c + ch, x * c + ch] = 1.0
    return jnp.asarray(e)


def _fold_tile_mats(w, c):
    """fold (w*c, c): sums lanes of the same channel; tile = fold.T broadcasts."""
    f = np.zeros((w * c, c), np.float32)
    for x in range(w):
        for ch in range(c):
            f[x * c + ch, ch] = 1.0
    return jnp.asarray(f), jnp.asarray(f.T)


# ------------------------------ Pallas kernel ------------------------------ #
def _fused_conv_block_kernel(
    x_ref,
    s1_ref, b1_ref, bias1_ref, g1_ref, be1_ref, f1_ref, t1_ref, d1_ref, e1_ref,
    s2_ref, b2_ref, bias2_ref, g2_ref, be2_ref, f2_ref, t2_ref, d2_ref, e2_ref,
    s3_ref, b3_ref, bias3_ref, g3_ref, be3_ref,
    o_ref,
    *, counts):
    """conv3x3+BN+ReLU (+2x2 maxpool) x3, fully fused, activations stay in VMEM."""
    f32 = jnp.float32

    def dot(a, b):
        return jnp.dot(a, b, preferred_element_type=f32)

    def conv(x2d, shift_ref, band_ref, bias_row):
        # 3x3 conv = 3 height taps (row-shift matmul) x banded width matmul.
        acc = bias_row                                        # (1, W*Cout)
        for dy in range(3):
            tap = dot(shift_ref[dy], x2d)                     # (R, W*Cin)
            acc = acc + dot(tap, band_ref[dy])                # (R, W*Cout)
        return acc

    def bn_relu(y, gamma, beta, fold_tile, count):
        # Training-mode BatchNorm (biased batch variance) + ReLU, per channel.
        col_sum = jnp.sum(y, axis=0, keepdims=True)           # (1, W*Cout)
        col_sq = jnp.sum(y * y, axis=0, keepdims=True)
        if fold_tile is None:                                 # Cout == 1
            ch_sum = jnp.sum(col_sum, axis=1, keepdims=True)  # (1, 1)
            ch_sq = jnp.sum(col_sq, axis=1, keepdims=True)
        else:
            fold, _ = fold_tile
            ch_sum = dot(col_sum, fold)                       # (1, Cout)
            ch_sq = dot(col_sq, fold)
        inv_n = 1.0 / count
        mean = ch_sum * inv_n
        var = ch_sq * inv_n - mean * mean
        scale = gamma * jax.lax.rsqrt(var + BN_EPS)
        shift = beta - mean * scale
        if fold_tile is not None:
            _, tile = fold_tile
            scale = dot(scale, tile)                          # (1, W*Cout)
            shift = dot(shift, tile)
        return jnp.maximum(y * scale + shift, 0.0)

    def maxpool(z, d_ref, e_ref):
        # 2x2 / stride-2 maxpool via exact 0/1 row- and lane-decimation matmuls.
        rows = jnp.maximum(dot(d_ref[0], z), dot(d_ref[1], z))        # (R/2, W*C)
        return jnp.maximum(dot(rows, e_ref[0]), dot(rows, e_ref[1]))  # (R/2, W*C/2)

    # Stage 1: conv1 -> bn1 -> relu -> pool
    y = conv(x_ref[...], s1_ref, b1_ref, bias1_ref[...])
    y = bn_relu(y, g1_ref[...], be1_ref[...], (f1_ref[...], t1_ref[...]), counts[0])
    y = maxpool(y, d1_ref, e1_ref)
    # Stage 2: conv2 -> bn2 -> relu -> pool
    y = conv(y, s2_ref, b2_ref, bias2_ref[...])
    y = bn_relu(y, g2_ref[...], be2_ref[...], (f2_ref[...], t2_ref[...]), counts[1])
    y = maxpool(y, d2_ref, e2_ref)
    # Stage 3: conv3 (Cout = 1) -> bn3 -> relu
    y = conv(y, s3_ref, b3_ref, bias3_ref[...])
    y = bn_relu(y, g3_ref[...], be3_ref[...], None, counts[2])
    o_ref[...] = y


# ----------------------------- Module wrapper ------------------------------ #
def init_conv_params(key, c1, c2, c3):
    """Deterministic synthetic parameters (same shapes as the torch module)."""
    ks = jax.random.split(key, 6)

    def conv_params(k, cin, cout):
        kw, kb = jax.random.split(k)
        w = jax.random.normal(kw, (3, 3, cin, cout), jnp.float32) * 0.1  # HWIO
        b = jax.random.normal(kb, (cout,), jnp.float32) * 0.1
        return w, b

    def bn_params(k, c):
        g = 1.0 + 0.1 * jax.random.normal(k, (c,), jnp.float32)
        be = jnp.zeros((c,), jnp.float32)
        return g, be

    w1, b1 = conv_params(ks[0], c1, c2)
    w2, b2 = conv_params(ks[1], c2, c3)
    w3, b3 = conv_params(ks[2], c3, 1)
    g1, be1 = bn_params(ks[3], c2)
    g2, be2 = bn_params(ks[4], c3)
    g3, be3 = bn_params(ks[5], 1)
    return dict(w1=w1, b1=b1, g1=g1, be1=be1,
                w2=w2, b2=b2, g2=g2, be2=be2,
                w3=w3, b3=b3, g3=g3, be3=be3)


def prepare_conv_block(params, n, h, w):
    """One-time host-side prepack of weights into the kernel's matmul operands."""
    c1, c2 = params["w1"].shape[2], params["w1"].shape[3]
    c3 = params["w2"].shape[3]
    h2, w2 = h // 2, w // 2
    h3, w3 = h2 // 2, w2 // 2
    f1, t1 = _fold_tile_mats(w, c2)
    f2, t2 = _fold_tile_mats(w2, c3)
    return (
        # stage 1
        _row_shift_mats(n, h),
        _banded_conv_mats(params["w1"], w),
        jnp.tile(params["b1"], w).reshape(1, w * c2),
        params["g1"].reshape(1, c2), params["be1"].reshape(1, c2),
        f1, t1,
        _row_pool_mats(n, h), _lane_pool_mats(w, c2),
        # stage 2
        _row_shift_mats(n, h2),
        _banded_conv_mats(params["w2"], w2),
        jnp.tile(params["b2"], w2).reshape(1, w2 * c3),
        params["g2"].reshape(1, c3), params["be2"].reshape(1, c3),
        f2, t2,
        _row_pool_mats(n, h2), _lane_pool_mats(w2, c3),
        # stage 3
        _row_shift_mats(n, h3),
        _banded_conv_mats(params["w3"], w3),
        jnp.tile(params["b3"], w3).reshape(1, w3 * 1),
        params["g3"].reshape(1, 1), params["be3"].reshape(1, 1),
    )


@jax.jit
def conv_block_forward(x_nchw, ops):
    """Forward of Conv_: input/output NCHW (PyTorch convention)."""
    n, c1, h, w = x_nchw.shape
    h3, w3 = h // 4, w // 4
    # lane-dense 2-D slab: rows = (n, y), lanes = (x, ci)
    x2d = jnp.transpose(x_nchw, (0, 2, 3, 1)).reshape(n * h, w * c1)
    counts = (float(n * h * w),
              float(n * (h // 2) * (w // 2)),
              float(n * h3 * w3))
    kernel = functools.partial(_fused_conv_block_kernel, counts=counts)
    vmem_spec = pl.BlockSpec(memory_space=pltpu.MemorySpace.VMEM)
    out2d = pl.pallas_call(
        kernel,
        out_shape=jax.ShapeDtypeStruct((n * h3, w3), jnp.float32),
        in_specs=[vmem_spec] * (1 + len(ops)),
        out_specs=vmem_spec,
    )(x2d, *ops)
    return jnp.transpose(out2d.reshape(n, h3, w3, 1), (0, 3, 1, 2))


# ---------------------------- Plain-JAX reference --------------------------- #
def _reference_forward(x_nchw, params):
    def conv_bn_relu(x, wk, b, g, be):
        y = jax.lax.conv_general_dilated(
            x, wk, window_strides=(1, 1), padding=((1, 1), (1, 1)),
            dimension_numbers=("NHWC", "HWIO", "NHWC"),
            precision=jax.lax.Precision.HIGHEST) + b
        mean = jnp.mean(y, axis=(0, 1, 2))
        var = jnp.var(y, axis=(0, 1, 2))
        return jnp.maximum((y - mean) * g / jnp.sqrt(var + BN_EPS) + be, 0.0)

    def pool(x):
        n, h, w, c = x.shape
        return jnp.max(x.reshape(n, h // 2, 2, w // 2, 2, c), axis=(2, 4))

    x = jnp.transpose(x_nchw, (0, 2, 3, 1))
    x = pool(conv_bn_relu(x, params["w1"], params["b1"], params["g1"], params["be1"]))
    x = pool(conv_bn_relu(x, params["w2"], params["b2"], params["g2"], params["be2"]))
    x = conv_bn_relu(x, params["w3"], params["b3"], params["g3"], params["be3"])
    return jnp.transpose(x, (0, 3, 1, 2))


if __name__ == "__main__":
    key = jax.random.PRNGKey(0)
    kx, kp = jax.random.split(key)

    # Small shapes: batch=2, c1=4, c2=8, c3=16, spatial=16x16.
    n, c1, c2, c3, hw = 2, 4, 8, 16, 16
    x = jax.random.normal(kx, (n, c1, hw, hw), jnp.float32)     # NCHW
    params = init_conv_params(kp, c1, c2, c3)
    ops = prepare_conv_block(params, n, hw, hw)

    out = conv_block_forward(x, ops)
    out = jax.block_until_ready(out)

    assert out.shape == (n, 1, hw // 4, hw // 4), out.shape
    assert bool(jnp.all(out >= 0.0))            # ReLU output is non-negative

    ref = _reference_forward(x, params)
    max_err = float(jnp.max(jnp.abs(out - ref)))
    assert max_err < 3e-2, f"max abs error vs reference: {max_err}"
    print("KERNEL_OK")
</pallas_src>

<mosaic_0001>
module attributes {stable_mosaic.version = 11 : i64} {
  func.func @_fused_conv_block_kernel(%arg0: memref<32x64xf32, #tpu.memory_space<vmem>>, %arg1: memref<3x32x32xf32, #tpu.memory_space<vmem>>, %arg2: memref<3x64x128xf32, #tpu.memory_space<vmem>>, %arg3: memref<1x128xf32, #tpu.memory_space<vmem>>, %arg4: memref<1x8xf32, #tpu.memory_space<vmem>>, %arg5: memref<1x8xf32, #tpu.memory_space<vmem>>, %arg6: memref<128x8xf32, #tpu.memory_space<vmem>>, %arg7: memref<8x128xf32, #tpu.memory_space<vmem>>, %arg8: memref<2x16x32xf32, #tpu.memory_space<vmem>>, %arg9: memref<2x128x64xf32, #tpu.memory_space<vmem>>, %arg10: memref<3x16x16xf32, #tpu.memory_space<vmem>>, %arg11: memref<3x64x128xf32, #tpu.memory_space<vmem>>, %arg12: memref<1x128xf32, #tpu.memory_space<vmem>>, %arg13: memref<1x16xf32, #tpu.memory_space<vmem>>, %arg14: memref<1x16xf32, #tpu.memory_space<vmem>>, %arg15: memref<128x16xf32, #tpu.memory_space<vmem>>, %arg16: memref<16x128xf32, #tpu.memory_space<vmem>>, %arg17: memref<2x8x16xf32, #tpu.memory_space<vmem>>, %arg18: memref<2x128x64xf32, #tpu.memory_space<vmem>>, %arg19: memref<3x8x8xf32, #tpu.memory_space<vmem>>, %arg20: memref<3x64x4xf32, #tpu.memory_space<vmem>>, %arg21: memref<1x4xf32, #tpu.memory_space<vmem>>, %arg22: memref<1x1xf32, #tpu.memory_space<vmem>>, %arg23: memref<1x1xf32, #tpu.memory_space<vmem>>, %arg24: memref<8x4xf32, #tpu.memory_space<vmem>>) attributes {dimension_semantics = [], scalar_prefetch = 0 : i64, scratch_operands = 0 : i64, tpu.core_type = #tpu.core_type<tc>} {
    %c0 = arith.constant 0 : index
    %c0_0 = arith.constant 0 : index
    %0 = vector.load %arg0[%c0, %c0_0] : memref<32x64xf32, #tpu.memory_space<vmem>>, vector<32x64xf32>
    %c0_1 = arith.constant 0 : index
    %c0_2 = arith.constant 0 : index
    %1 = vector.load %arg3[%c0_1, %c0_2] : memref<1x128xf32, #tpu.memory_space<vmem>>, vector<1x128xf32>
    %c0_3 = arith.constant 0 : index
    %c0_4 = arith.constant 0 : index
    %c0_5 = arith.constant 0 : index
    %2 = vector.load %arg1[%c0_3, %c0_4, %c0_5] : memref<3x32x32xf32, #tpu.memory_space<vmem>>, vector<1x32x32xf32>
    %3 = vector.shape_cast %2 : vector<1x32x32xf32> to vector<32x32xf32>
    %cst = arith.constant dense<0.000000e+00> : vector<32x64xf32>
    %4 = tpu.matmul %3, %0, %cst {dimension_numbers = #tpu.dot_dimension_numbers<[1], [0], [0], [1], [0, 0, 1, 1], [], []>} : vector<32x32xf32>, vector<32x64xf32>, vector<32x64xf32> -> vector<32x64xf32>
    %c0_6 = arith.constant 0 : index
    %c0_7 = arith.constant 0 : index
    %c0_8 = arith.constant 0 : index
    %5 = vector.load %arg2[%c0_6, %c0_7, %c0_8] : memref<3x64x128xf32, #tpu.memory_space<vmem>>, vector<1x64x128xf32>
    %6 = vector.shape_cast %5 : vector<1x64x128xf32> to vector<64x128xf32>
    %cst_9 = arith.constant dense<0.000000e+00> : vector<32x128xf32>
    %7 = tpu.matmul %4, %6, %cst_9 {dimension_numbers = #tpu.dot_dimension_numbers<[1], [0], [0], [1], [0, 0, 1, 1], [], []>} : vector<32x64xf32>, vector<64x128xf32>, vector<32x128xf32> -> vector<32x128xf32>
    %8 = vector.broadcast %1 : vector<1x128xf32> to vector<32x128xf32>
    %9 = arith.addf %8, %7 : vector<32x128xf32>
    %c1 = arith.constant 1 : index
    %c0_10 = arith.constant 0 : index
    %c0_11 = arith.constant 0 : index
    %10 = vector.load %arg1[%c1, %c0_10, %c0_11] : memref<3x32x32xf32, #tpu.memory_space<vmem>>, vector<1x32x32xf32>
    %11 = vector.shape_cast %10 : vector<1x32x32xf32> to vector<32x32xf32>
    %cst_12 = arith.constant dense<0.000000e+00> : vector<32x64xf32>
    %12 = tpu.matmul %11, %0, %cst_12 {dimension_numbers = #tpu.dot_dimension_numbers<[1], [0], [0], [1], [0, 0, 1, 1], [], []>} : vector<32x32xf32>, vector<32x64xf32>, vector<32x64xf32> -> vector<32x64xf32>
    %c1_13 = arith.constant 1 : index
    %c0_14 = arith.constant 0 : index
    %c0_15 = arith.constant 0 : index
    %13 = vector.load %arg2[%c1_13, %c0_14, %c0_15] : memref<3x64x128xf32, #tpu.memory_space<vmem>>, vector<1x64x128xf32>
    %14 = vector.shape_cast %13 : vector<1x64x128xf32> to vector<64x128xf32>
    %cst_16 = arith.constant dense<0.000000e+00> : vector<32x128xf32>
    %15 = tpu.matmul %12, %14, %cst_16 {dimension_numbers = #tpu.dot_dimension_numbers<[1], [0], [0], [1], [0, 0, 1, 1], [], []>} : vector<32x64xf32>, vector<64x128xf32>, vector<32x128xf32> -> vector<32x128xf32>
    %16 = arith.addf %9, %15 : vector<32x128xf32>
    %c2 = arith.constant 2 : index
    %c0_17 = arith.constant 0 : index
    %c0_18 = arith.constant 0 : index
    %17 = vector.load %arg1[%c2, %c0_17, %c0_18] : memref<3x32x32xf32, #tpu.memory_space<vmem>>, vector<1x32x32xf32>
    %18 = vector.shape_cast %17 : vector<1x32x32xf32> to vector<32x32xf32>
    %cst_19 = arith.constant dense<0.000000e+00> : vector<32x64xf32>
    %19 = tpu.matmul %18, %0, %cst_19 {dimension_numbers = #tpu.dot_dimension_numbers<[1], [0], [0], [1], [0, 0, 1, 1], [], []>} : vector<32x32xf32>, vector<32x64xf32>, vector<32x64xf32> -> vector<32x64xf32>
    %c2_20 = arith.constant 2 : index
    %c0_21 = arith.constant 0 : index
    %c0_22 = arith.constant 0 : index
    %20 = vector.load %arg2[%c2_20, %c0_21, %c0_22] : memref<3x64x128xf32, #tpu.memory_space<vmem>>, vector<1x64x128xf32>
    %21 = vector.shape_cast %20 : vector<1x64x128xf32> to vector<64x128xf32>
    %cst_23 = arith.constant dense<0.000000e+00> : vector<32x128xf32>
    %22 = tpu.matmul %19, %21, %cst_23 {dimension_numbers = #tpu.dot_dimension_numbers<[1], [0], [0], [1], [0, 0, 1, 1], [], []>} : vector<32x64xf32>, vector<64x128xf32>, vector<32x128xf32> -> vector<32x128xf32>
    %23 = arith.addf %16, %22 : vector<32x128xf32>
    %c0_24 = arith.constant 0 : index
    %c0_25 = arith.constant 0 : index
    %24 = vector.load %arg4[%c0_24, %c0_25] : memref<1x8xf32, #tpu.memory_space<vmem>>, vector<1x8xf32>
    %c0_26 = arith.constant 0 : index
    %c0_27 = arith.constant 0 : index
    %25 = vector.load %arg5[%c0_26, %c0_27] : memref<1x8xf32, #tpu.memory_space<vmem>>, vector<1x8xf32>
    %c0_28 = arith.constant 0 : index
    %c0_29 = arith.constant 0 : index
    %26 = vector.load %arg6[%c0_28, %c0_29] : memref<128x8xf32, #tpu.memory_space<vmem>>, vector<128x8xf32>
    %c0_30 = arith.constant 0 : index
    %c0_31 = arith.constant 0 : index
    %27 = vector.load %arg7[%c0_30, %c0_31] : memref<8x128xf32, #tpu.memory_space<vmem>>, vector<8x128xf32>
    %cst_32 = arith.constant dense<0.000000e+00> : vector<128xf32>
    %28 = vector.multi_reduction <add>, %23, %cst_32 [0] : vector<32x128xf32> to vector<128xf32>
    %29 = vector.shape_cast %28 : vector<128xf32> to vector<1x128xf32>
    %30 = arith.mulf %23, %23 : vector<32x128xf32>
    %cst_33 = arith.constant dense<0.000000e+00> : vector<128xf32>
    %31 = vector.multi_reduction <add>, %30, %cst_33 [0] : vector<32x128xf32> to vector<128xf32>
    %32 = vector.shape_cast %31 : vector<128xf32> to vector<1x128xf32>
    %cst_34 = arith.constant dense<0.000000e+00> : vector<1x8xf32>
    %33 = tpu.matmul %29, %26, %cst_34 {dimension_numbers = #tpu.dot_dimension_numbers<[1], [0], [0], [1], [0, 0, 1, 1], [], []>} : vector<1x128xf32>, vector<128x8xf32>, vector<1x8xf32> -> vector<1x8xf32>
    %cst_35 = arith.constant dense<0.000000e+00> : vector<1x8xf32>
    %34 = tpu.matmul %32, %26, %cst_35 {dimension_numbers = #tpu.dot_dimension_numbers<[1], [0], [0], [1], [0, 0, 1, 1], [], []>} : vector<1x128xf32>, vector<128x8xf32>, vector<1x8xf32> -> vector<1x8xf32>
    %cst_36 = arith.constant 0.001953125 : f32
    %35 = vector.broadcast %cst_36 : f32 to vector<1x8xf32>
    %36 = arith.mulf %33, %35 : vector<1x8xf32>
    %cst_37 = arith.constant 0.001953125 : f32
    %37 = vector.broadcast %cst_37 : f32 to vector<1x8xf32>
    %38 = arith.mulf %34, %37 : vector<1x8xf32>
    %39 = arith.mulf %36, %36 : vector<1x8xf32>
    %40 = arith.subf %38, %39 : vector<1x8xf32>
    %cst_38 = arith.constant 9.99999974E-6 : f32
    %41 = vector.broadcast %cst_38 : f32 to vector<1x8xf32>
    %42 = arith.addf %40, %41 : vector<1x8xf32>
    %43 = math.rsqrt %42 : vector<1x8xf32>
    %44 = arith.mulf %24, %43 : vector<1x8xf32>
    %45 = arith.mulf %36, %44 : vector<1x8xf32>
    %46 = arith.subf %25, %45 : vector<1x8xf32>
    %cst_39 = arith.constant dense<0.000000e+00> : vector<1x128xf32>
    %47 = tpu.matmul %44, %27, %cst_39 {dimension_numbers = #tpu.dot_dimension_numbers<[1], [0], [0], [1], [0, 0, 1, 1], [], []>} : vector<1x8xf32>, vector<8x128xf32>, vector<1x128xf32> -> vector<1x128xf32>
    %cst_40 = arith.constant dense<0.000000e+00> : vector<1x128xf32>
    %48 = tpu.matmul %46, %27, %cst_40 {dimension_numbers = #tpu.dot_dimension_numbers<[1], [0], [0], [1], [0, 0, 1, 1], [], []>} : vector<1x8xf32>, vector<8x128xf32>, vector<1x128xf32> -> vector<1x128xf32>
    %49 = vector.broadcast %47 : vector<1x128xf32> to vector<32x128xf32>
    %50 = arith.mulf %23, %49 : vector<32x128xf32>
    %51 = vector.broadcast %48 : vector<1x128xf32> to vector<32x128xf32>
    %52 = arith.addf %50, %51 : vector<32x128xf32>
    %cst_41 = arith.constant 0.000000e+00 : f32
    %53 = vector.broadcast %cst_41 : f32 to vector<32x128xf32>
    %54 = arith.maximumf %52, %53 : vector<32x128xf32>
    %c0_42 = arith.constant 0 : index
    %c0_43 = arith.constant 0 : index
    %c0_44 = arith.constant 0 : index
    %55 = vector.load %arg8[%c0_42, %c0_43, %c0_44] : memref<2x16x32xf32, #tpu.memory_space<vmem>>, vector<1x16x32xf32>
    %56 = vector.shape_cast %55 : vector<1x16x32xf32> to vector<16x32xf32>
    %cst_45 = arith.constant dense<0.000000e+00> : vector<16x128xf32>
    %57 = tpu.matmul %56, %54, %cst_45 {dimension_numbers = #tpu.dot_dimension_numbers<[1], [0], [0], [1], [0, 0, 1, 1], [], []>} : vector<16x32xf32>, vector<32x128xf32>, vector<16x128xf32> -> vector<16x128xf32>
    %c1_46 = arith.constant 1 : index
    %c0_47 = arith.constant 0 : index
    %c0_48 = arith.constant 0 : index
    %58 = vector.load %arg8[%c1_46, %c0_47, %c0_48] : memref<2x16x32xf32, #tpu.memory_space<vmem>>, vector<1x16x32xf32>
    %59 = vector.shape_cast %58 : vector<1x16x32xf32> to vector<16x32xf32>
    %cst_49 = arith.constant dense<0.000000e+00> : vector<16x128xf32>
    %60 = tpu.matmul %59, %54, %cst_49 {dimension_numbers = #tpu.dot_dimension_numbers<[1], [0], [0], [1], [0, 0, 1, 1], [], []>} : vector<16x32xf32>, vector<32x128xf32>, vector<16x128xf32> -> vector<16x128xf32>
    %61 = arith.maximumf %57, %60 : vector<16x128xf32>
    %c0_50 = arith.constant 0 : index
    %c0_51 = arith.constant 0 : index
    %c0_52 = arith.constant 0 : index
    %62 = vector.load %arg9[%c0_50, %c0_51, %c0_52] : memref<2x128x64xf32, #tpu.memory_space<vmem>>, vector<1x128x64xf32>
    %63 = vector.shape_cast %62 : vector<1x128x64xf32> to vector<128x64xf32>
    %cst_53 = arith.constant dense<0.000000e+00> : vector<16x64xf32>
    %64 = tpu.matmul %61, %63, %cst_53 {dimension_numbers = #tpu.dot_dimension_numbers<[1], [0], [0], [1], [0, 0, 1, 1], [], []>} : vector<16x128xf32>, vector<128x64xf32>, vector<16x64xf32> -> vector<16x64xf32>
    %c1_54 = arith.constant 1 : index
    %c0_55 = arith.constant 0 : index
    %c0_56 = arith.constant 0 : index
    %65 = vector.load %arg9[%c1_54, %c0_55, %c0_56] : memref<2x128x64xf32, #tpu.memory_space<vmem>>, vector<1x128x64xf32>
    %66 = vector.shape_cast %65 : vector<1x128x64xf32> to vector<128x64xf32>
    %cst_57 = arith.constant dense<0.000000e+00> : vector<16x64xf32>
    %67 = tpu.matmul %61, %66, %cst_57 {dimension_numbers = #tpu.dot_dimension_numbers<[1], [0], [0], [1], [0, 0, 1, 1], [], []>} : vector<16x128xf32>, vector<128x64xf32>, vector<16x64xf32> -> vector<16x64xf32>
    %68 = arith.maximumf %64, %67 : vector<16x64xf32>
    %c0_58 = arith.constant 0 : index
    %c0_59 = arith.constant 0 : index
    %69 = vector.load %arg12[%c0_58, %c0_59] : memref<1x128xf32, #tpu.memory_space<vmem>>, vector<1x128xf32>
    %c0_60 = arith.constant 0 : index
    %c0_61 = arith.constant 0 : index
    %c0_62 = arith.constant 0 : index
    %70 = vector.load %arg10[%c0_60, %c0_61, %c0_62] : memref<3x16x16xf32, #tpu.memory_space<vmem>>, vector<1x16x16xf32>
    %71 = vector.shape_cast %70 : vector<1x16x16xf32> to vector<16x16xf32>
    %cst_63 = arith.constant dense<0.000000e+00> : vector<16x64xf32>
    %72 = tpu.matmul %71, %68, %cst_63 {dimension_numbers = #tpu.dot_dimension_numbers<[1], [0], [0], [1], [0, 0, 1, 1], [], []>} : vector<16x16xf32>, vector<16x64xf32>, vector<16x64xf32> -> vector<16x64xf32>
    %c0_64 = arith.constant 0 : index
    %c0_65 = arith.constant 0 : index
    %c0_66 = arith.constant 0 : index
    %73 = vector.load %arg11[%c0_64, %c0_65, %c0_66] : memref<3x64x128xf32, #tpu.memory_space<vmem>>, vector<1x64x128xf32>
    %74 = vector.shape_cast %73 : vector<1x64x128xf32> to vector<64x128xf32>
    %cst_67 = arith.constant dense<0.000000e+00> : vector<16x128xf32>
    %75 = tpu.matmul %72, %74, %cst_67 {dimension_numbers = #tpu.dot_dimension_numbers<[1], [0], [0], [1], [0, 0, 1, 1], [], []>} : vector<16x64xf32>, vector<64x128xf32>, vector<16x128xf32> -> vector<16x128xf32>
    %76 = vector.broadcast %69 : vector<1x128xf32> to vector<16x128xf32>
    %77 = arith.addf %76, %75 : vector<16x128xf32>
    %c1_68 = arith.constant 1 : index
    %c0_69 = arith.constant 0 : index
    %c0_70 = arith.constant 0 : index
    %78 = vector.load %arg10[%c1_68, %c0_69, %c0_70] : memref<3x16x16xf32, #tpu.memory_space<vmem>>, vector<1x16x16xf32>
    %79 = vector.shape_cast %78 : vector<1x16x16xf32> to vector<16x16xf32>
    %cst_71 = arith.constant dense<0.000000e+00> : vector<16x64xf32>
    %80 = tpu.matmul %79, %68, %cst_71 {dimension_numbers = #tpu.dot_dimension_numbers<[1], [0], [0], [1], [0, 0, 1, 1], [], []>} : vector<16x16xf32>, vector<16x64xf32>, vector<16x64xf32> -> vector<16x64xf32>
    %c1_72 = arith.constant 1 : index
    %c0_73 = arith.constant 0 : index
    %c0_74 = arith.constant 0 : index
    %81 = vector.load %arg11[%c1_72, %c0_73, %c0_74] : memref<3x64x128xf32, #tpu.memory_space<vmem>>, vector<1x64x128xf32>
    %82 = vector.shape_cast %81 : vector<1x64x128xf32> to vector<64x128xf32>
    %cst_75 = arith.constant dense<0.000000e+00> : vector<16x128xf32>
    %83 = tpu.matmul %80, %82, %cst_75 {dimension_numbers = #tpu.dot_dimension_numbers<[1], [0], [0], [1], [0, 0, 1, 1], [], []>} : vector<16x64xf32>, vector<64x128xf32>, vector<16x128xf32> -> vector<16x128xf32>
    %84 = arith.addf %77, %83 : vector<16x128xf32>
    %c2_76 = arith.constant 2 : index
    %c0_77 = arith.constant 0 : index
    %c0_78 = arith.constant 0 : index
    %85 = vector.load %arg10[%c2_76, %c0_77, %c0_78] : memref<3x16x16xf32, #tpu.memory_space<vmem>>, vector<1x16x16xf32>
    %86 = vector.shape_cast %85 : vector<1x16x16xf32> to vector<16x16xf32>
    %cst_79 = arith.constant dense<0.000000e+00> : vector<16x64xf32>
    %87 = tpu.matmul %86, %68, %cst_79 {dimension_numbers = #tpu.dot_dimension_numbers<[1], [0], [0], [1], [0, 0, 1, 1], [], []>} : vector<16x16xf32>, vector<16x64xf32>, vector<16x64xf32> -> vector<16x64xf32>
    %c2_80 = arith.constant 2 : index
    %c0_81 = arith.constant 0 : index
    %c0_82 = arith.constant 0 : index
    %88 = vector.load %arg11[%c2_80, %c0_81, %c0_82] : memref<3x64x128xf32, #tpu.memory_space<vmem>>, vector<1x64x128xf32>
    %89 = vector.shape_cast %88 : vector<1x64x128xf32> to vector<64x128xf32>
    %cst_83 = arith.constant dense<0.000000e+00> : vector<16x128xf32>
    %90 = tpu.matmul %87, %89, %cst_83 {dimension_numbers = #tpu.dot_dimension_numbers<[1], [0], [0], [1], [0, 0, 1, 1], [], []>} : vector<16x64xf32>, vector<64x128xf32>, vector<16x128xf32> -> vector<16x128xf32>
    %91 = arith.addf %84, %90 : vector<16x128xf32>
    %c0_84 = arith.constant 0 : index
    %c0_85 = arith.constant 0 : index
    %92 = vector.load %arg13[%c0_84, %c0_85] : memref<1x16xf32, #tpu.memory_space<vmem>>, vector<1x16xf32>
    %c0_86 = arith.constant 0 : index
    %c0_87 = arith.constant 0 : index
    %93 = vector.load %arg14[%c0_86, %c0_87] : memref<1x16xf32, #tpu.memory_space<vmem>>, vector<1x16xf32>
    %c0_88 = arith.constant 0 : index
    %c0_89 = arith.constant 0 : index
    %94 = vector.load %arg15[%c0_88, %c0_89] : memref<128x16xf32, #tpu.memory_space<vmem>>, vector<128x16xf32>
    %c0_90 = arith.constant 0 : index
    %c0_91 = arith.constant 0 : index
    %95 = vector.load %arg16[%c0_90, %c0_91] : memref<16x128xf32, #tpu.memory_space<vmem>>, vector<16x128xf32>
    %cst_92 = arith.constant dense<0.000000e+00> : vector<128xf32>
    %96 = vector.multi_reduction <add>, %91, %cst_92 [0] : vector<16x128xf32> to vector<128xf32>
    %97 = vector.shape_cast %96 : vector<128xf32> to vector<1x128xf32>
    %98 = arith.mulf %91, %91 : vector<16x128xf32>
    %cst_93 = arith.constant dense<0.000000e+00> : vector<128xf32>
    %99 = vector.multi_reduction <add>, %98, %cst_93 [0] : vector<16x128xf32> to vector<128xf32>
    %100 = vector.shape_cast %99 : vector<128xf32> to vector<1x128xf32>
    %cst_94 = arith.constant dense<0.000000e+00> : vector<1x16xf32>
    %101 = tpu.matmul %97, %94, %cst_94 {dimension_numbers = #tpu.dot_dimension_numbers<[1], [0], [0], [1], [0, 0, 1, 1], [], []>} : vector<1x128xf32>, vector<128x16xf32>, vector<1x16xf32> -> vector<1x16xf32>
    %cst_95 = arith.constant dense<0.000000e+00> : vector<1x16xf32>
    %102 = tpu.matmul %100, %94, %cst_95 {dimension_numbers = #tpu.dot_dimension_numbers<[1], [0], [0], [1], [0, 0, 1, 1], [], []>} : vector<1x128xf32>, vector<128x16xf32>, vector<1x16xf32> -> vector<1x16xf32>
    %cst_96 = arith.constant 7.812500e-03 : f32
    %103 = vector.broadcast %cst_96 : f32 to vector<1x16xf32>
    %104 = arith.mulf %101, %103 : vector<1x16xf32>
    %cst_97 = arith.constant 7.812500e-03 : f32
    %105 = vector.broadcast %cst_97 : f32 to vector<1x16xf32>
    %106 = arith.mulf %102, %105 : vector<1x16xf32>
    %107 = arith.mulf %104, %104 : vector<1x16xf32>
    %108 = arith.subf %106, %107 : vector<1x16xf32>
    %cst_98 = arith.constant 9.99999974E-6 : f32
    %109 = vector.broadcast %cst_98 : f32 to vector<1x16xf32>
    %110 = arith.addf %108, %109 : vector<1x16xf32>
    %111 = math.rsqrt %110 : vector<1x16xf32>
    %112 = arith.mulf %92, %111 : vector<1x16xf32>
    %113 = arith.mulf %104, %112 : vector<1x16xf32>
    %114 = arith.subf %93, %113 : vector<1x16xf32>
    %cst_99 = arith.constant dense<0.000000e+00> : vector<1x128xf32>
    %115 = tpu.matmul %112, %95, %cst_99 {dimension_numbers = #tpu.dot_dimension_numbers<[1], [0], [0], [1], [0, 0, 1, 1], [], []>} : vector<1x16xf32>, vector<16x128xf32>, vector<1x128xf32> -> vector<1x128xf32>
    %cst_100 = arith.constant dense<0.000000e+00> : vector<1x128xf32>
    %116 = tpu.matmul %114, %95, %cst_100 {dimension_numbers = #tpu.dot_dimension_numbers<[1], [0], [0], [1], [0, 0, 1, 1], [], []>} : vector<1x16xf32>, vector<16x128xf32>, vector<1x128xf32> -> vector<1x128xf32>
    %117 = vector.broadcast %115 : vector<1x128xf32> to vector<16x128xf32>
    %118 = arith.mulf %91, %117 : vector<16x128xf32>
    %119 = vector.broadcast %116 : vector<1x128xf32> to vector<16x128xf32>
    %120 = arith.addf %118, %119 : vector<16x128xf32>
    %cst_101 = arith.constant 0.000000e+00 : f32
    %121 = vector.broadcast %cst_101 : f32 to vector<16x128xf32>
    %122 = arith.maximumf %120, %121 : vector<16x128xf32>
    %c0_102 = arith.constant 0 : index
    %c0_103 = arith.constant 0 : index
    %c0_104 = arith.constant 0 : index
    %123 = vector.load %arg17[%c0_102, %c0_103, %c0_104] : memref<2x8x16xf32, #tpu.memory_space<vmem>>, vector<1x8x16xf32>
    %124 = vector.shape_cast %123 : vector<1x8x16xf32> to vector<8x16xf32>
    %cst_105 = arith.constant dense<0.000000e+00> : vector<8x128xf32>
    %125 = tpu.matmul %124, %122, %cst_105 {dimension_numbers = #tpu.dot_dimension_numbers<[1], [0], [0], [1], [0, 0, 1, 1], [], []>} : vector<8x16xf32>, vector<16x128xf32>, vector<8x128xf32> -> vector<8x128xf32>
    %c1_106 = arith.constant 1 : index
    %c0_107 = arith.constant 0 : index
    %c0_108 = arith.constant 0 : index
    %126 = vector.load %arg17[%c1_106, %c0_107, %c0_108] : memref<2x8x16xf32, #tpu.memory_space<vmem>>, vector<1x8x16xf32>
    %127 = vector.shape_cast %126 : vector<1x8x16xf32> to vector<8x16xf32>
    %cst_109 = arith.constant dense<0.000000e+00> : vector<8x128xf32>
    %128 = tpu.matmul %127, %122, %cst_109 {dimension_numbers = #tpu.dot_dimension_numbers<[1], [0], [0], [1], [0, 0, 1, 1], [], []>} : vector<8x16xf32>, vector<16x128xf32>, vector<8x128xf32> -> vector<8x128xf32>
    %129 = arith.maximumf %125, %128 : vector<8x128xf32>
    %c0_110 = arith.constant 0 : index
    %c0_111 = arith.constant 0 : index
    %c0_112 = arith.constant 0 : index
    %130 = vector.load %arg18[%c0_110, %c0_111, %c0_112] : memref<2x128x64xf32, #tpu.memory_space<vmem>>, vector<1x128x64xf32>
    %131 = vector.shape_cast %130 : vector<1x128x64xf32> to vector<128x64xf32>
    %cst_113 = arith.constant dense<0.000000e+00> : vector<8x64xf32>
    %132 = tpu.matmul %129, %131, %cst_113 {dimension_numbers = #tpu.dot_dimension_numbers<[1], [0], [0], [1], [0, 0, 1, 1], [], []>} : vector<8x128xf32>, vector<128x64xf32>, vector<8x64xf32> -> vector<8x64xf32>
    %c1_114 = arith.constant 1 : index
    %c0_115 = arith.constant 0 : index
    %c0_116 = arith.constant 0 : index
    %133 = vector.load %arg18[%c1_114, %c0_115, %c0_116] : memref<2x128x64xf32, #tpu.memory_space<vmem>>, vector<1x128x64xf32>
    %134 = vector.shape_cast %133 : vector<1x128x64xf32> to vector<128x64xf32>
    %cst_117 = arith.constant dense<0.000000e+00> : vector<8x64xf32>
    %135 = tpu.matmul %129, %134, %cst_117 {dimension_numbers = #tpu.dot_dimension_numbers<[1], [0], [0], [1], [0, 0, 1, 1], [], []>} : vector<8x128xf32>, vector<128x64xf32>, vector<8x64xf32> -> vector<8x64xf32>
    %136 = arith.maximumf %132, %135 : vector<8x64xf32>
    %c0_118 = arith.constant 0 : index
    %c0_119 = arith.constant 0 : index
    %137 = vector.load %arg21[%c0_118, %c0_119] : memref<1x4xf32, #tpu.memory_space<vmem>>, vector<1x4xf32>
    %c0_120 = arith.constant 0 : index
    %c0_121 = arith.constant 0 : index
    %c0_122 = arith.constant 0 : index
    %138 = vector.load %arg19[%c0_120, %c0_121, %c0_122] : memref<3x8x8xf32, #tpu.memory_space<vmem>>, vector<1x8x8xf32>
    %139 = vector.shape_cast %138 : vector<1x8x8xf32> to vector<8x8xf32>
    %cst_123 = arith.constant dense<0.000000e+00> : vector<8x64xf32>
    %140 = tpu.matmul %139, %136, %cst_123 {dimension_numbers = #tpu.dot_dimension_numbers<[1], [0], [0], [1], [0, 0, 1, 1], [], []>} : vector<8x8xf32>, vector<8x64xf32>, vector<8x64xf32> -> vector<8x64xf32>
    %c0_124 = arith.constant 0 : index
    %c0_125 = arith.constant 0 : index
    %c0_126 = arith.constant 0 : index
    %141 = vector.load %arg20[%c0_124, %c0_125, %c0_126] : memref<3x64x4xf32, #tpu.memory_space<vmem>>, vector<1x64x4xf32>
    %142 = vector.shape_cast %141 : vector<1x64x4xf32> to vector<64x4xf32>
    %cst_127 = arith.constant dense<0.000000e+00> : vector<8x4xf32>
    %143 = tpu.matmul %140, %142, %cst_127 {dimension_numbers = #tpu.dot_dimension_numbers<[1], [0], [0], [1], [0, 0, 1, 1], [], []>} : vector<8x64xf32>, vector<64x4xf32>, vector<8x4xf32> -> vector<8x4xf32>
    %144 = vector.broadcast %137 : vector<1x4xf32> to vector<8x4xf32>
    %145 = arith.addf %144, %143 : vector<8x4xf32>
    %c1_128 = arith.constant 1 : index
    %c0_129 = arith.constant 0 : index
    %c0_130 = arith.constant 0 : index
    %146 = vector.load %arg19[%c1_128, %c0_129, %c0_130] : memref<3x8x8xf32, #tpu.memory_space<vmem>>, vector<1x8x8xf32>
    %147 = vector.shape_cast %146 : vector<1x8x8xf32> to vector<8x8xf32>
    %cst_131 = arith.constant dense<0.000000e+00> : vector<8x64xf32>
    %148 = tpu.matmul %147, %136, %cst_131 {dimension_numbers = #tpu.dot_dimension_numbers<[1], [0], [0], [1], [0, 0, 1, 1], [], []>} : vector<8x8xf32>, vector<8x64xf32>, vector<8x64xf32> -> vector<8x64xf32>
    %c1_132 = arith.constant 1 : index
    %c0_133 = arith.constant 0 : index
    %c0_134 = arith.constant 0 : index
    %149 = vector.load %arg20[%c1_132, %c0_133, %c0_134] : memref<3x64x4xf32, #tpu.memory_space<vmem>>, vector<1x64x4xf32>
    %150 = vector.shape_cast %149 : vector<1x64x4xf32> to vector<64x4xf32>
    %cst_135 = arith.constant dense<0.000000e+00> : vector<8x4xf32>
    %151 = tpu.matmul %148, %150, %cst_135 {dimension_numbers = #tpu.dot_dimension_numbers<[1], [0], [0], [1], [0, 0, 1, 1], [], []>} : vector<8x64xf32>, vector<64x4xf32>, vector<8x4xf32> -> vector<8x4xf32>
    %152 = arith.addf %145, %151 : vector<8x4xf32>
    %c2_136 = arith.constant 2 : index
    %c0_137 = arith.constant 0 : index
    %c0_138 = arith.constant 0 : index
    %153 = vector.load %arg19[%c2_136, %c0_137, %c0_138] : memref<3x8x8xf32, #tpu.memory_space<vmem>>, vector<1x8x8xf32>
    %154 = vector.shape_cast %153 : vector<1x8x8xf32> to vector<8x8xf32>
    %cst_139 = arith.constant dense<0.000000e+00> : vector<8x64xf32>
    %155 = tpu.matmul %154, %136, %cst_139 {dimension_numbers = #tpu.dot_dimension_numbers<[1], [0], [0], [1], [0, 0, 1, 1], [], []>} : vector<8x8xf32>, vector<8x64xf32>, vector<8x64xf32> -> vector<8x64xf32>
    %c2_140 = arith.constant 2 : index
    %c0_141 = arith.constant 0 : index
    %c0_142 = arith.constant 0 : index
    %156 = vector.load %arg20[%c2_140, %c0_141, %c0_142] : memref<3x64x4xf32, #tpu.memory_space<vmem>>, vector<1x64x4xf32>
    %157 = vector.shape_cast %156 : vector<1x64x4xf32> to vector<64x4xf32>
    %cst_143 = arith.constant dense<0.000000e+00> : vector<8x4xf32>
    %158 = tpu.matmul %155, %157, %cst_143 {dimension_numbers = #tpu.dot_dimension_numbers<[1], [0], [0], [1], [0, 0, 1, 1], [], []>} : vector<8x64xf32>, vector<64x4xf32>, vector<8x4xf32> -> vector<8x4xf32>
    %159 = arith.addf %152, %158 : vector<8x4xf32>
    %c0_144 = arith.constant 0 : index
    %c0_145 = arith.constant 0 : index
    %160 = vector.load %arg22[%c0_144, %c0_145] : memref<1x1xf32, #tpu.memory_space<vmem>>, vector<1x1xf32>
    %c0_146 = arith.constant 0 : index
    %c0_147 = arith.constant 0 : index
    %161 = vector.load %arg23[%c0_146, %c0_147] : memref<1x1xf32, #tpu.memory_space<vmem>>, vector<1x1xf32>
    %cst_148 = arith.constant dense<0.000000e+00> : vector<4xf32>
    %162 = vector.multi_reduction <add>, %159, %cst_148 [0] : vector<8x4xf32> to vector<4xf32>
    %163 = vector.shape_cast %162 : vector<4xf32> to vector<1x4xf32>
    %164 = arith.mulf %159, %159 : vector<8x4xf32>
    %cst_149 = arith.constant dense<0.000000e+00> : vector<4xf32>
    %165 = vector.multi_reduction <add>, %164, %cst_149 [0] : vector<8x4xf32> to vector<4xf32>
    %166 = vector.shape_cast %165 : vector<4xf32> to vector<1x4xf32>
    %cst_150 = arith.constant dense<0.000000e+00> : vector<1xf32>
    %167 = vector.multi_reduction <add>, %163, %cst_150 [1] : vector<1x4xf32> to vector<1xf32>
    %168 = vector.shape_cast %167 : vector<1xf32> to vector<1x1xf32>
    %cst_151 = arith.constant dense<0.000000e+00> : vector<1xf32>
    %169 = vector.multi_reduction <add>, %166, %cst_151 [1] : vector<1x4xf32> to vector<1xf32>
    %170 = vector.shape_cast %169 : vector<1xf32> to vector<1x1xf32>
    %cst_152 = arith.constant 3.125000e-02 : f32
    %171 = vector.broadcast %cst_152 : f32 to vector<1x1xf32>
    %172 = arith.mulf %168, %171 : vector<1x1xf32>
    %cst_153 = arith.constant 3.125000e-02 : f32
    %173 = vector.broadcast %cst_153 : f32 to vector<1x1xf32>
    %174 = arith.mulf %170, %173 : vector<1x1xf32>
    %175 = arith.mulf %172, %172 : vector<1x1xf32>
    %176 = arith.subf %174, %175 : vector<1x1xf32>
    %cst_154 = arith.constant 9.99999974E-6 : f32
    %177 = vector.broadcast %cst_154 : f32 to vector<1x1xf32>
    %178 = arith.addf %176, %177 : vector<1x1xf32>
    %179 = math.rsqrt %178 : vector<1x1xf32>
    %180 = arith.mulf %160, %179 : vector<1x1xf32>
    %181 = arith.mulf %172, %180 : vector<1x1xf32>
    %182 = arith.subf %161, %181 : vector<1x1xf32>
    %183 = vector.broadcast %180 : vector<1x1xf32> to vector<8x4xf32>
    %184 = arith.mulf %159, %183 : vector<8x4xf32>
    %185 = vector.broadcast %182 : vector<1x1xf32> to vector<8x4xf32>
    %186 = arith.addf %184, %185 : vector<8x4xf32>
    %cst_155 = arith.constant 0.000000e+00 : f32
    %187 = vector.broadcast %cst_155 : f32 to vector<8x4xf32>
    %188 = arith.maximumf %186, %187 : vector<8x4xf32>
    %c0_156 = arith.constant 0 : index
    %c0_157 = arith.constant 0 : index
    %189 = vector.load %arg24[%c0_156, %c0_157] : memref<8x4xf32, #tpu.memory_space<vmem>>, vector<8x4xf32>
    tpu.vector_store %arg24[%c0_156, %c0_157], %188 {strides = array<i32>} : memref<8x4xf32, #tpu.memory_space<vmem>>, vector<8x4xf32>,
    return
  }
}

</mosaic_0001>

<bundles_post_ra>
// kernel: conv_block_forward.1
= control target key start
LH: loop header
LB: loop body
LE: loop exit
PB: predicated region body
PF: predicated region fallthrough
CT: control target
= control target key end

     0   :  { %s5731_s0 = inlined_call_operand.vmem [shape: f32[32,64], index: 0, kind: input, shape index: {}]   ;;  %s5732_s1 = inlined_call_operand.vmem [shape: f32[3,32,32], index: 1, kind: input, shape index: {}]   ;;  %s5733_s2 = inlined_call_operand.vmem [shape: f32[3,64,128], index: 2, kind: input, shape index: {}]   ;;  %s5734_s3 = inlined_call_operand.vmem [shape: f32[1,128], index: 3, kind: input, shape index: {}]   ;;  %s5735_s4 = inlined_call_operand.vmem [shape: f32[1,8], index: 4, kind: input, shape index: {}]   ;;  %s5736_s5 = inlined_call_operand.vmem [shape: f32[1,8], index: 5, kind: input, shape index: {}]   ;;  %s5737_s6 = inlined_call_operand.vmem [shape: f32[128,8], index: 6, kind: input, shape index: {}]   ;;  %s5738_s7 = inlined_call_operand.vmem [shape: f32[8,128], index: 7, kind: input, shape index: {}]   ;;  %s5739_s8 = inlined_call_operand.vmem [shape: f32[2,16,32], index: 8, kind: input, shape index: {}]   ;;  %s5740_s9 = inlined_call_operand.vmem [shape: f32[2,128,64], index: 9, kind: input, shape index: {}]   ;;  %s5741_s10 = inlined_call_operand.vmem [shape: f32[3,16,16], index: 10, kind: input, shape index: {}]   ;;  %s5742_s11 = inlined_call_operand.vmem [shape: f32[3,64,128], index: 11, kind: input, shape index: {}]   ;;  %s5743_s12 = inlined_call_operand.vmem [shape: f32[1,128], index: 12, kind: input, shape index: {}]   ;;  %s5744_s13 = inlined_call_operand.vmem [shape: f32[1,16], index: 13, kind: input, shape index: {}]   ;;  %s5745_s14 = inlined_call_operand.vmem [shape: f32[1,16], index: 14, kind: input, shape index: {}]   ;;  %s5746_s15 = inlined_call_operand.vmem [shape: f32[128,16], index: 15, kind: input, shape index: {}]   ;;  %s5747_s16 = inlined_call_operand.vmem [shape: f32[16,128], index: 16, kind: input, shape index: {}]   ;;  %s5748_s17 = inlined_call_operand.vmem [shape: f32[2,8,16], index: 17, kind: input, shape index: {}]   ;;  %s5749_s18 = inlined_call_operand.vmem [shape: f32[2,128,64], index: 18, kind: input, shape index: {}]   ;;  %s5750_s19 = inlined_call_operand.vmem [shape: f32[3,8,8], index: 19, kind: input, shape index: {}]   ;;  %s5751_s20 = inlined_call_operand.vmem [shape: f32[3,64,4], index: 20, kind: input, shape index: {}]   ;;  %s5752_s21 = inlined_call_operand.vmem [shape: f32[1,4], index: 21, kind: input, shape index: {}]   ;;  %s5753_s22 = inlined_call_operand.<no memory space> [shape: f32[1,1], index: 22, kind: input, shape index: {}]   ;;  %s5754_s24 = inlined_call_operand.hbm [shape: f32[8,4], index: 24, kind: output, shape index: {}]   ;;  %s5755_s23 = inlined_call_operand.<no memory space> [shape: f32[1,1], index: 23, kind: input, shape index: {}]  }
   0x1   :  { %5761 = sst [smem:[#allocation7_spill]] %s5731_s0  ;;  %v29_v0 = vstv %s5753_s22  ;;  %v31_v1 = vstv %s5755_s23 }
   0x2   :  { %5762 = sst [smem:[#allocation8_spill]] %s5732_s1  ;;  %30 = vst [vmem:[#allocation2] sm:$0x1] %v29_v0  ;;  %32 = vst [vmem:[#allocation3] sm:$0x1] %v31_v1 }
   0x3   :  { %5763 = sst [smem:[#allocation9_spill]] %s5733_s2 }
   0x4   :  { %5764 = sst [smem:[#allocation10_spill]] %s5734_s3 }
   0x5   :  { %5765 = sst [smem:[#allocation11_spill]] %s5735_s4 }
   0x6   :  { %5766 = sst [smem:[#allocation12_spill]] %s5736_s5 }
   0x7   :  { %5767 = sst [smem:[#allocation13_spill]] %s5737_s6 }
   0x8   :  { %5768 = sst [smem:[#allocation14_spill]] %s5738_s7 }
   0x9   :  { %5769 = sst [smem:[#allocation15_spill]] %s5739_s8 }
   0xa   :  { %s5770_s29 = sld [smem:[#allocation7_spill]]  ;;  %vm91_vm0 = vcmask 261120   ;;  %s5771_s4 = sld [smem:[#allocation8_spill]] }
   0xb   :  { %s5772_s26 = sld [smem:[#allocation9_spill]] }
  0x10   :  { %v82_v2 = vld [vmem:[%s5770_s29] sm:$0xff]  ;;  %v83_v3 = vld [vmem:[%s5770_s29 + $0x8] sm:$0xff]  ;;  %v84_v4 = vld [vmem:[%s5770_s29 + $0x10] sm:$0xff] }
  0x11   :  { %v4851_v5 = vpack.c.bf16 %v83_v3, %v82_v2  ;;  %v85_v6 = vld [vmem:[%s5770_s29 + $0x18] sm:$0xff]  ;;  %v87_v7 = vld [vmem:[%s5771_s4] sm:$0xff]  ;;  %v190_v10 = vld [vmem:[%s5772_s26 + $0x8] sm:$0xff] }
  0x12   :  { %v4859_v8 = vpack.c.bf16 %v85_v6, %v84_v4  ;;  %3652 = vmatprep.mubr.msk.f32.mxu0 %vm91_vm0, %v87_v7  ;;  %v189_v9 = vld [vmem:[%s5772_s26] sm:$0xff] }
  0x13   :  { %4243 = vmatprep.subr.bf16.mxu0 %v4851_v5  ;;  %v4250_v11 = vpack.c.bf16 %v190_v10, %v189_v9 }
  0x14   :  { %4245 = vmatpush3.bf16.msra.mxu0 %v4851_v5 }
  0x15   :  { %4247 = vmatprep.subr.bf16.mxu0 %v4859_v8 }
  0x16   :  { %33 = vsyncpa [#allocation5], 0  ;;  %v191_v12 = vld [vmem:[%s5772_s26 + $0x10] sm:$0xff]  ;;  %v192_v13 = vld [vmem:[%s5772_s26 + $0x18] sm:$0xff]  ;;  %vm197_vm1 = vcmask 523264   ;;  %s5773_s8 = sld [smem:[#allocation13_spill]] }
  0x17   :  { %v88_v14 = vld [vmem:[%s5771_s4 + $0x8] sm:$0xff]  ;;  %v89_v15 = vld [vmem:[%s5771_s4 + $0x10] sm:$0xff]  ;;  %v4254_v16 = vpack.c.bf16 %v192_v13, %v191_v12  ;;  %v193_v17 = vld [vmem:[%s5772_s26 + $0x20] sm:$0xff]  ;;  %v4706_v54 = vmov 0.0|0.0   ;;  %vm4707_vm2 = vmmov 0   ;;  %s5774_s22 = sld [smem:[#allocation10_spill]] }
  0x18   :  { %4249 = vmatpush3.bf16.msra.mxu0 %v4859_v8  ;;  %v194_v18 = vld [vmem:[%s5772_s26 + $0x28] sm:$0xff]  ;;  %v90_v19 = vld [vmem:[%s5771_s4 + $0x18] sm:$0xff]  ;;  %v195_v21 = vld [vmem:[%s5772_s26 + $0x30] sm:$0xff]  ;;  %s5775_s23 = sld [smem:[#allocation14_spill]]  ;;  %s5776_s27 = sld [smem:[#allocation11_spill]]  ;;  %vm919_vm3 = vcmask 64512  }
  0x19   :  { %4251 = vmatprep.subr.bf16.mxu0 %v4250_v11  ;;  %v4258_v20 = vpack.c.bf16 %v194_v18, %v193_v17  ;;  %v196_v22 = vld [vmem:[%s5772_s26 + $0x38] sm:$0xff]  ;;  %v3208_v24 = vld [vmem:[%s5772_s26 + $0x40] sm:$0xff]  ;;  %v3209_v25 = vld [vmem:[%s5772_s26 + $0x48] sm:$0xff]  ;;  %s5777_s6 = sld [smem:[#allocation12_spill]]  ;;  %s5778_s0 = sld [smem:[#allocation15_spill]]  ;;  %vm1443_vm4 = vcmask 130048  }
  0x1a   :  { %v4262_v23 = vpack.c.bf16 %v196_v22, %v195_v21  ;;  %v3210_v26 = vld [vmem:[%s5772_s26 + $0x50] sm:$0xff]  ;;  %v4274_v27 = vpack.c.bf16 %v3209_v25, %v3208_v24  ;;  %v3211_v28 = vld [vmem:[%s5772_s26 + $0x58] sm:$0xff]  ;;  %v3200_v34 = vld [vmem:[%s5771_s4 + $0x20] sm:$0xff]  ;;  %vm3124_vm5 = vcmask 31744  }
  0x1b   :  { %3653 = vmatmul.mubr.msk.f32.vlgmr.msra.gmra.mrb[0].mxu0 %vm91_vm0, %v88_v14  ;;  %v4278_v29 = vpack.c.bf16 %v3211_v28, %v3210_v26  ;;  %v3201_v35 = vld [vmem:[%s5771_s4 + $0x28] sm:$0xff]  ;;  %v3202_v36 = vld [vmem:[%s5771_s4 + $0x30] sm:$0xff]  ;;  %v3203_v37 = vld [vmem:[%s5771_s4 + $0x38] sm:$0xff] }
  0x1c   :  { %3655 = vmatprep.mubr.msk.f32.mxu0 %vm91_vm0, %v89_v15  ;;  %4253 = vmatpush3.bf16.msra.mxu0 %v4250_v11  ;;  %v3220_v38 = vld [vmem:[%s5771_s4 + $0x40] sm:$0xff]  ;;  %v3221_v39 = vld [vmem:[%s5771_s4 + $0x48] sm:$0xff]  ;;  %v3222_v40 = vld [vmem:[%s5771_s4 + $0x50] sm:$0xff] }
  0x1d   :  { %4255 = vmatprep.subr.bf16.mxu0 %v4254_v16  ;;  %4275 = vmatprep.subr.bf16.mxu1 %v4274_v27  ;;  %v3223_v41 = vld [vmem:[%s5771_s4 + $0x58] sm:$0xff]  ;;  %v3212_v42 = vld [vmem:[%s5772_s26 + $0x60] sm:$0xff]  ;;  %v3213_v43 = vld [vmem:[%s5772_s26 + $0x68] sm:$0xff] }
  0x1e   :  { %4277 = vmatpush3.bf16.msra.mxu1 %v4274_v27  ;;  %v4282_v44 = vpack.c.bf16 %v3213_v43, %v3212_v42  ;;  %v3214_v45 = vld [vmem:[%s5772_s26 + $0x70] sm:$0xff]  ;;  %v3215_v46 = vld [vmem:[%s5772_s26 + $0x78] sm:$0xff]  ;;  %v3228_v48 = vld [vmem:[%s5772_s26 + $0x80] sm:$0xff] }
  0x1f   :  { %3656 = vmatmul.mubr.msk.f32.gmra.mrb[2].mxu0 %vm91_vm0, %v90_v19  ;;  %4279 = vmatprep.subr.bf16.mxu1 %v4278_v29  ;;  %v4286_v47 = vpack.c.bf16 %v3215_v46, %v3214_v45  ;;  %v3229_v49 = vld [vmem:[%s5772_s26 + $0x88] sm:$0xff]  ;;  %v731_v51 = vld [vmem:[%s5773_s8] sm:$0xff]  ;;  %v733_v53 = vld [vmem:[%s5773_s8 + $0x10] sm:$0xff] }
  0x20   :  { %4257 = vmatpush3.bf16.msra.mxu0 %v4254_v16  ;;  %v4298_v50 = vpack.c.bf16 %v3229_v49, %v3228_v48  ;;  %v732_v52 = vld [vmem:[%s5773_s8 + $0x8] sm:$0xff]  ;;  %v734_v56 = vld [vmem:[%s5773_s8 + $0x18] sm:$0xff]  ;;  %v3230_v62 = vld [vmem:[%s5772_s26 + $0x90] sm:$0xff] }
  0x21   :  { %4259 = vmatprep.subr.bf16.mxu0 %v4258_v20  ;;  %v4315_v55 = vpack.c.bf16 %v732_v52, %v731_v51  ;;  %v4318_v57 = vpack.c.bf16 %v734_v56, %v733_v53  ;;  %v3231_v63 = vld [vmem:[%s5772_s26 + $0x98] sm:$0xff]  ;;  %v3232_v3 = vld [vmem:[%s5772_s26 + $0xa0] sm:$0xff]  ;;  %v3233_v4 = vld [vmem:[%s5772_s26 + $0xa8] sm:$0xff] }
  0x22   :  { %4281 = vmatpush3.bf16.msra.mxu1 %v4278_v29  ;;  %v4302_v2 = vpack.c.bf16 %v3231_v63, %v3230_v62  ;;  %v4306_v7 = vpack.c.bf16 %v3233_v4, %v3232_v3  ;;  %v3235_v9 = vld [vmem:[%s5772_s26 + $0xb8] sm:$0xff]  ;;  %v735_v15 = vld [vmem:[%s5773_s8 + $0x20] sm:$0xff]  ;;  %v736_v16 = vld [vmem:[%s5773_s8 + $0x28] sm:$0xff] }
  0x23   :  { %4283 = vmatprep.subr.bf16.mxu1 %v4282_v44  ;;  %v4321_v17 = vpack.c.bf16 %v736_v16, %v735_v15  ;;  %v737_v18 = vld [vmem:[%s5773_s8 + $0x30] sm:$0xff]  ;;  %v738_v19 = vld [vmem:[%s5773_s8 + $0x38] sm:$0xff]  ;;  %v739_v21 = vld [vmem:[%s5773_s8 + $0x40] sm:$0xff] }
  0x24   :  { %4261 = vmatpush3.bf16.msra.mxu0 %v4258_v20  ;;  %v4324_v20 = vpack.c.bf16 %v738_v19, %v737_v18  ;;  %v740_v22 = vld [vmem:[%s5773_s8 + $0x48] sm:$0xff]  ;;  %v741_v24 = vld [vmem:[%s5773_s8 + $0x50] sm:$0xff]  ;;  %v742_v25 = vld [vmem:[%s5773_s8 + $0x58] sm:$0xff] }
  0x25   :  { %4263 = vmatprep.subr.bf16.mxu0 %v4262_v23  ;;  %v4330_v26 = vpack.c.bf16 %v742_v25, %v741_v24  ;;  %v743_v27 = vld [vmem:[%s5773_s8 + $0x60] sm:$0xff]  ;;  %v744_v28 = vld [vmem:[%s5773_s8 + $0x68] sm:$0xff] }
  0x26   :  { %4285 = vmatpush3.bf16.msra.mxu1 %v4282_v44  ;;  %v4333_v29 = vpack.c.bf16 %v744_v28, %v743_v27  ;;  %v729_v16 = vld [vmem:[%s5776_s27] sm:$0x1]  ;;  %v3249_v24 = vld [vmem:[%s5740_s9 + $0x88] sm:$0xff]  ;;  %v3251_v27 = vld [vmem:[%s5740_s9 + $0x98] sm:$0xff] }
  0x27   :  { %4287 = vmatprep.subr.bf16.mxu1 %v4286_v47  ;;  %v730_v19 = vld [vmem:[%s5777_s6] sm:$0x1] }
  0x28   :  { %4265 = vmatpush3.bf16.msra.mxu0 %v4262_v23  ;;  %v4327_v23 = vpack.c.bf16 %v740_v22, %v739_v21  ;;  %v1086_v22 = vld [vmem:[%s5778_s0] sm:$0xff] }
  0x29   :  { %4267 = vmatprep.subr.bf16.mxu0 %v4851_v5 }
  0x2a   :  { %4289 = vmatpush3.bf16.msra.mxu1 %v4286_v47 }
  0x2b   :  { %4299 = vmatprep.subr.bf16.mxu1 %v4298_v50 }
  0xee   :  { %v3654_v30 = vpop.f32.mrb[0].mxu0 }
  0xef   :  { %v170_v31 = vpop.f32.mrb[1].mxu0 }
  0xf0   :  { %3674 = vmatprep.mubr.msk.f32.mxu0 %vm197_vm1, %v170_v31  ;;  %v746_v31 = vld [vmem:[%s5773_s8 + $0x78] sm:$0xff] }
  0xf1   :  { %3675 = vmatmul.mubr.msk.f32.vlgmr.msra.gmra.mrb[4].mxu0 %vm197_vm1, %v3654_v30  ;;  %v745_v30 = vld [vmem:[%s5773_s8 + $0x70] sm:$0xff] }
  0xf2   :  { %v3657_v32 = vpop.f32.mrb[2].mxu0  ;;  %4269 = vmatpush3.bf16.msra.mxu0 %v4851_v5 }
  0xf3   :  { %v180_v33 = vpop.f32.mrb[3].mxu0  ;;  %4271 = vmatprep.subr.bf16.mxu0 %v4859_v8 }
  0xf4   :  { %3677 = vmatprep.mubr.msk.f32.mxu0 %vm197_vm1, %v180_v33  ;;  %v4708_v33 = vmov 0.0  }
  0xf5   :  { %3678 = vmatmul.mubr.msk.f32.gmra.mrb[6].mxu0 %vm197_vm1, %v3657_v32  ;;  %v4336_v32 = vpack.c.bf16 %v746_v31, %v745_v30  ;;  %v3253_v30 = vld [vmem:[%s5740_s9 + $0xa8] sm:$0xff] }
  0xf6   :  { %4273 = vmatpush3.bf16.msra.mxu0 %v4859_v8  ;;  %3688 = vmatprep.mubr.msk.f32.mxu0 %vm91_vm0, %v3200_v34  ;;  %v3199_v34 = vld [vmem:[%s5774_s22] ss:$0 sm:$0xff] }
  0xf7   :  { %4291 = vmatprep.subr.bf16.mxu0 %v4851_v5 }
  0xf9   :  { %3689 = vmatmul.mubr.msk.f32.vlgmr.msra.gmra.mrb[8].mxu0 %vm91_vm0, %v3201_v35 }
  0xfa   :  { %4293 = vmatpush3.bf16.msra.mxu0 %v4851_v5  ;;  %3691 = vmatprep.mubr.msk.f32.mxu0 %vm91_vm0, %v3202_v36 }
  0xfb   :  { %4295 = vmatprep.subr.bf16.mxu0 %v4859_v8 }
  0xfd   :  { %3692 = vmatmul.mubr.msk.f32.gmra.mrb[10].mxu0 %vm91_vm0, %v3203_v37 }
  0xfe   :  { %4297 = vmatpush3.bf16.msra.mxu0 %v4859_v8  ;;  %3724 = vmatprep.mubr.msk.f32.mxu0 %vm91_vm0, %v3220_v38  ;;  %v3234_v8 = vld [vmem:[%s5772_s26 + $0xb0] sm:$0xff] }
  0xff   :  { %4314 = vmatprep.subr.bf16.mxu0 %v4706_v54  ;;  %v4310_v11 = vpack.c.bf16 %v3235_v9, %v3234_v8 }
 0x101   :  { %3725 = vmatmul.mubr.msk.f32.vlgmr.msra.gmra.mrb[12].mxu0 %vm91_vm0, %v3221_v39 }
 0x102   :  { %3727 = vmatprep.mubr.msk.f32.mxu0 %vm91_vm0, %v3222_v40  ;;  %4316 = vmatpush3.bf16.msra.mxu0 %v4315_v55 }
 0x103   :  { %4317 = vmatprep.subr.bf16.mxu0 %v4706_v54 }
 0x105   :  { %3728 = vmatmul.mubr.msk.f32.gmra.mrb[14].mxu0 %vm91_vm0, %v3223_v41 }
 0x106   :  { %4319 = vmatpush3.bf16.msra.mxu0 %v4318_v57  ;;  %3784 = vmatprep.mubr.msk.f32.mxu0 %vm4707_vm2, %v4708_v33 }
 0x107   :  { %4320 = vmatprep.subr.bf16.mxu0 %v4706_v54 }
 0x10a   :  { %4322 = vmatpush3.bf16.msra.mxu0 %v4321_v17 }
 0x10b   :  { %4323 = vmatprep.subr.bf16.mxu0 %v4706_v54 }
 0x10e   :  { %4325 = vmatpush3.bf16.msra.mxu0 %v4324_v20 }
 0x10f   :  { %4326 = vmatprep.subr.bf16.mxu0 %v4706_v54 }
 0x112   :  { %4328 = vmatpush3.bf16.msra.mxu0 %v4327_v23 }
 0x113   :  { %4329 = vmatprep.subr.bf16.mxu0 %v4706_v54 }
 0x116   :  { %4331 = vmatpush3.bf16.msra.mxu0 %v4330_v26 }
 0x117   :  { %4332 = vmatprep.subr.bf16.mxu0 %v4706_v54 }
 0x11a   :  { %4334 = vmatpush3.bf16.msra.mxu0 %v4333_v29 }
 0x11b   :  { %4335 = vmatprep.subr.bf16.mxu0 %v4706_v54 }
 0x11e   :  { %4337 = vmatpush3.bf16.msra.mxu0 %v4336_v32 }
 0x11f   :  { %3822 = vmatprep.subr.mxu0 %v4708_v33 }
 0x1c4   :  { %v4991_v58 = vpop.f32.mrb[4].mxu0 }
 0x1c5   :  { %v4993_v59 = vpop.f32.mrb[5].mxu0  ;;  %v302_v35 = vadd.f32 %v4991_v58, %v3199_v34 }
 0x1c6   :  { %v301_v36 = vadd.f32 %v3199_v34, %v4993_v59 }
 0x1c8   :  { %v4995_v60 = vpop.f32.mrb[6].mxu0 }
 0x1c9   :  { %v4997_v61 = vpop.f32.mrb[7].mxu0  ;;  %v304_v41 = vadd.f32 %v4995_v60, %v3199_v34 }
 0x1ca   :  { %v303_v42 = vadd.f32 %v3199_v34, %v4997_v61  ;;  %v3255_v34 = vld [vmem:[%s5740_s9 + $0xb8] sm:$0xff] }
 0x1cc   :  { %v3690_v0 = vpop.f32.mrb[8].mxu0 }
 0x1cd   :  { %v388_v1 = vpop.f32.mrb[9].mxu0 }
 0x1ce   :  { %3710 = vmatprep.mubr.msk.f32.mxu1 %vm197_vm1, %v388_v1 }
 0x1cf   :  { %3711 = vmatmul.mubr.msk.f32.vlgmr.msra.gmra.mrb[0].mxu1 %vm197_vm1, %v3690_v0 }
 0x1d0   :  { %4301 = vmatpush3.bf16.msra.mxu1 %v4298_v50  ;;  %v3693_v5 = vpop.f32.mrb[10].mxu0 }
 0x1d1   :  { %4303 = vmatprep.subr.bf16.mxu1 %v4302_v2  ;;  %v398_v6 = vpop.f32.mrb[11].mxu0 }
 0x1d2   :  { %3713 = vmatprep.mubr.msk.f32.mxu1 %vm197_vm1, %v398_v6  ;;  %v747_v6 = vld [vmem:[%s5775_s23] sm:$0xff] }
 0x1d3   :  { %3714 = vmatmul.mubr.msk.f32.gmra.mrb[2].mxu1 %vm197_vm1, %v3693_v5 }
 0x1d4   :  { %4305 = vmatpush3.bf16.msra.mxu1 %v4302_v2  ;;  %v3726_v10 = vpop.f32.mrb[12].mxu0 }
 0x1d5   :  { %4307 = vmatprep.subr.bf16.mxu1 %v4306_v7  ;;  %v600_v12 = vpop.f32.mrb[13].mxu0 }
 0x1d6   :  { %3746 = vmatprep.mubr.msk.f32.mxu1 %vm197_vm1, %v600_v12 }
 0x1d8   :  { %4309 = vmatpush3.bf16.msra.mxu1 %v4306_v7  ;;  %v3729_v13 = vpop.f32.mrb[14].mxu0 }
 0x1d9   :  { %4311 = vmatprep.subr.bf16.mxu1 %v4310_v11  ;;  %v610_v14 = vpop.f32.mrb[15].mxu0 }
 0x1dc   :  { %4313 = vmatpush3.bf16.msra.mxu1 %v4310_v11 }
 0x1dd   :  { %4338 = vmatprep.subr.bf16.mxu1 %v4706_v54 }
 0x1df   :  { %3747 = vmatmul.mubr.msk.f32.vlgmr.msra.gmra.mrb[0].mxu1 %vm197_vm1, %v3726_v10 }
 0x1e0   :  { %3749 = vmatprep.mubr.msk.f32.mxu1 %vm197_vm1, %v610_v14  ;;  %4340 = vmatpush3.bf16.msra.mxu1 %v4315_v55 }
 0x1e1   :  { %4341 = vmatprep.subr.bf16.mxu1 %v4706_v54 }
 0x1e3   :  { %3750 = vmatmul.mubr.msk.f32.gmra.mrb[2].mxu1 %vm197_vm1, %v3729_v13 }
 0x1e4   :  { %4343 = vmatpush3.bf16.msra.mxu1 %v4318_v57  ;;  %3819 = vmatprep.mubr.msk.f32.mxu1 %vm4707_vm2, %v4708_v33 }
 0x1e5   :  { %4344 = vmatprep.subr.bf16.mxu1 %v4706_v54 }
 0x1e8   :  { %4346 = vmatpush3.bf16.msra.mxu1 %v4321_v17 }
 0x1e9   :  { %4347 = vmatprep.subr.bf16.mxu1 %v4706_v54 }
 0x1ec   :  { %4349 = vmatpush3.bf16.msra.mxu1 %v4324_v20 }
 0x1ed   :  { %4350 = vmatprep.subr.bf16.mxu1 %v4706_v54 }
 0x1f0   :  { %4352 = vmatpush3.bf16.msra.mxu1 %v4327_v23  ;;  %v3248_v23 = vld [vmem:[%s5740_s9 + $0x80] sm:$0xff] }
 0x1f1   :  { %4353 = vmatprep.subr.bf16.mxu1 %v4706_v54  ;;  %v4410_v25 = vpack.c.bf16 %v3249_v24, %v3248_v23  ;;  %v1267_v23 = vld [vmem:[%s5740_s9 + $0x60] sm:$0xff]  ;;  %v1268_v24 = vld [vmem:[%s5740_s9 + $0x68] sm:$0xff] }
 0x1f4   :  { %4355 = vmatpush3.bf16.msra.mxu1 %v4330_v26  ;;  %v3250_v26 = vld [vmem:[%s5740_s9 + $0x90] sm:$0xff] }
 0x1f5   :  { %4356 = vmatprep.subr.bf16.mxu1 %v4706_v54  ;;  %v4414_v28 = vpack.c.bf16 %v3251_v27, %v3250_v26  ;;  %v4402_v26 = vpack.c.bf16 %v1268_v24, %v1267_v23  ;;  %v3261_v27 = vld [vmem:[%s5740_s9 + $0xe8] sm:$0xff] }
 0x1f8   :  { %4358 = vmatpush3.bf16.msra.mxu1 %v4333_v29  ;;  %v3252_v29 = vld [vmem:[%s5740_s9 + $0xa0] sm:$0xff] }
 0x1f9   :  { %4359 = vmatprep.subr.bf16.mxu1 %v4706_v54  ;;  %v4418_v31 = vpack.c.bf16 %v3253_v30, %v3252_v29  ;;  %v1269_v29 = vld [vmem:[%s5740_s9 + $0x70] sm:$0xff]  ;;  %v1270_v30 = vld [vmem:[%s5740_s9 + $0x78] sm:$0xff] }
 0x1fc   :  { %4361 = vmatpush3.bf16.msra.mxu1 %v4336_v32  ;;  %v3254_v32 = vld [vmem:[%s5740_s9 + $0xb0] sm:$0xff] }
 0x1fd   :  { %4411 = vmatprep.subr.bf16.mxu1 %v4410_v25 }
 0x2b2   :  { %v3748_v37 = vpop.f32.mrb[0].mxu1 }
 0x2b3   :  { %v5084_v38 = vadd.f32 %v3748_v37, %v302_v35  ;;  %v706_v39 = vpop.f32.mrb[1].mxu1  ;;  %v4422_v35 = vpack.c.bf16 %v3255_v34, %v3254_v32  ;;  %v3257_v37 = vld [vmem:[%s5740_s9 + $0xc8] sm:$0xff]  ;;  %v4406_v32 = vpack.c.bf16 %v1270_v30, %v1269_v29  ;;  %v3263_v34 = vld [vmem:[%s5740_s9 + $0xf8] sm:$0xff]  ;;  %v3279_v30 = vld [vmem:[%s5742_s11 + $0x70] sm:$0xff] }
 0x2b4   :  { %v5086_v40 = vadd.f32 %v706_v39, %v301_v36  ;;  %v3256_v36 = vld [vmem:[%s5740_s9 + $0xc0] sm:$0xff] }
 0x2b5   :  { %v758_v43 = vmul.f32 %v5084_v38, %v5084_v38  ;;  %v4426_v39 = vpack.c.bf16 %v3257_v37, %v3256_v36 }
 0x2b6   :  { %v757_v44 = vmul.f32 %v5086_v40, %v5086_v40  ;;  %v3751_v45 = vpop.f32.mrb[2].mxu1  ;;  %v748_v48 = vadd.f32 %v5086_v40, %v5084_v38 }
 0x2b7   :  { %v5094_v46 = vadd.f32 %v3751_v45, %v304_v41  ;;  %v716_v47 = vpop.f32.mrb[3].mxu1  ;;  %v1066_v41 = vlaneseq }
 0x2b8   :  { %v5098_v49 = vadd.f32 %v716_v47, %v303_v42  ;;  %v761_v50 = vadd.f32 %v758_v43, %v757_v44 }
 0x2b9   :  { %v760_v53 = vmul.f32 %v5094_v46, %v5094_v46  ;;  %v1067_v42 = vshrl.u32 %v1066_v41, 7 }
 0x2ba   :  { %v749_v51 = vadd.f32 %v5098_v49, %v748_v48  ;;  %v759_v52 = vmul.f32 %v5098_v49, %v5098_v49 }
 0x2bb   :  { %v5156_v43 = vsub.s32 0, %v1067_v42 }
 0x2bc   :  { %v750_v55 = vadd.f32 %v5094_v46, %v749_v51  ;;  %v762_v56 = vadd.f32 %v761_v50, %v759_v52 }
 0x2be   :  { %v751_v57 = vrot.slane %v750_v55, 4  ;;  %v763_v58 = vadd.f32 %v762_v56, %v760_v53 }
 0x2c0   :  { %v752_v59 = vadd.f32 %v751_v57, %v750_v55  ;;  %v764_v60 = vrot.slane %v763_v58, 4 }
 0x2c2   :  { %v753_v61 = vrot.slane %v752_v59, 2  ;;  %v765_v62 = vadd.f32 %v764_v60, %v763_v58 }
 0x2c4   :  { %v754_v63 = vadd.f32 %v753_v61, %v752_v59  ;;  %v766_v0 = vrot.slane %v765_v62, 2 }
 0x2c6   :  { %v755_v1 = vrot.slane %v754_v63, 1  ;;  %v767_v2 = vadd.f32 %v766_v0, %v765_v62 }
 0x2c8   :  { %v756_v3 = vadd.f32 %v755_v1, %v754_v63  ;;  %v768_v4 = vrot.slane %v767_v2, 1 }
 0x2ca   :  { %3785 = vmatmul.mubr.f32.vlgmr.msra.gmra.mrb[16].mxu0 %v756_v3  ;;  %v769_v5 = vadd.f32 %v768_v4, %v767_v2  ;;  %v1256_v2 = vld [vmem:[%s5740_s9 + $0x8] sm:$0xff]  ;;  %v1257_v4 = vld [vmem:[%s5740_s9 + $0x10] sm:$0xff] }
 0x2cb   :  { %3824 = vmatprep.mubr.msk.f32.mxu0 %vm4707_vm2, %v4708_v33  ;;  %3823 = vmatpush3.msra.mxu0 %v747_v6 }
 0x2cc   :  { %3820 = vmatmul.mubr.f32.vlgmr.msra.gmra.mrb[4].mxu1 %v769_v5  ;;  %3827 = vmatprep.subr.mxu0 %v4708_v33  ;;  %v1258_v5 = vld [vmem:[%s5740_s9 + $0x18] sm:$0xff] }
 0x2cd   :  { %4413 = vmatpush3.bf16.msra.mxu1 %v4410_v25  ;;  %v3260_v25 = vld [vmem:[%s5740_s9 + $0xe0] sm:$0xff] }
 0x2ce   :  { %4415 = vmatprep.subr.bf16.mxu1 %v4414_v28 }
 0x2d1   :  { %4417 = vmatpush3.bf16.msra.mxu1 %v4414_v28  ;;  %v4434_v28 = vpack.c.bf16 %v3261_v27, %v3260_v25  ;;  %v3277_v25 = vld [vmem:[%s5742_s11 + $0x60] sm:$0xff] }
 0x2d2   :  { %4419 = vmatprep.subr.bf16.mxu1 %v4418_v31 }
 0x2d5   :  { %4421 = vmatpush3.bf16.msra.mxu1 %v4418_v31  ;;  %v3262_v31 = vld [vmem:[%s5740_s9 + $0xf0] sm:$0xff] }
 0x2d6   :  { %4423 = vmatprep.subr.bf16.mxu1 %v4422_v35 }
 0x2d9   :  { %4425 = vmatpush3.bf16.msra.mxu1 %v4422_v35  ;;  %v4438_v35 = vpack.c.bf16 %v3263_v34, %v3262_v31  ;;  %v3280_v31 = vld [vmem:[%s5742_s11 + $0x78] sm:$0xff] }
 0x2da   :  { %4427 = vmatprep.subr.bf16.mxu1 %v4426_v39  ;;  %v4478_v34 = vpack.c.bf16 %v3280_v31, %v3279_v30  ;;  %v1974_v31 = vld [vmem:[%s5744_s13] sm:$0x1] }
 0x2dd   :  { %4429 = vmatpush3.bf16.msra.mxu1 %v4426_v39 }
 0x39d   :  { %v836_v7 = vpop.f32.mrb[16].mxu0 }
 0x39e   :  { %v910_v8 = vmul.f32 0.001953125, %v836_v7  ;;  %v3786_v9 = vpop.f32.mrb[17].mxu0  ;;  %v4382_v7 = vpack.c.bf16 %v1258_v5, %v1257_v4  ;;  %v3284_v4 = vld [vmem:[%s5741_s10 + $0x28] sm:$0xff]  ;;  %v3273_v5 = vld [vmem:[%s5742_s11 + $0x40] sm:$0xff] }
 0x39f   :  { %v906_v10 = vpop.f32.mrb[4].mxu1  ;;  %v1260_v9 = vld [vmem:[%s5740_s9 + $0x28] sm:$0xff] }
 0x3a0   :  { %v912_v11 = vmul.f32 %v910_v8, %v910_v8  ;;  %v911_v12 = vmul.f32 0.001953125, %v906_v10  ;;  %v3821_v13 = vpop.f32.mrb[5].mxu1 }
 0x3a2   :  { %v913_v14 = vsub.f32 %v911_v12, %v912_v11  ;;  %v1261_v11 = vld [vmem:[%s5740_s9 + $0x30] sm:$0xff]  ;;  %v1262_v12 = vld [vmem:[%s5740_s9 + $0x38] sm:$0xff] }
 0x3a3   :  { %v4390_v13 = vpack.c.bf16 %v1262_v12, %v1261_v11  ;;  %v1979_v12 = vld [vmem:[%s5746_s15 + $0x18] sm:$0xff] }
 0x3a4   :  { %v914_v15 = vadd.f32 1e-05, %v913_v14  ;;  %v1263_v14 = vld [vmem:[%s5740_s9 + $0x40] sm:$0xff] }
 0x3a6   :  { %4676 = vrsqrt.f32 %v914_v15  ;;  %v1264_v15 = vld [vmem:[%s5740_s9 + $0x48] sm:$0xff] }
 0x3b0   :  { %v4677_v17 = vpop.eup %4676 }
 0x3b1   :  { %v916_v18 = vmul.f32 %v4677_v17, %v729_v16  ;;  %v4394_v16 = vpack.c.bf16 %v1264_v15, %v1263_v14  ;;  %v1265_v17 = vld [vmem:[%s5740_s9 + $0x50] sm:$0xff]  ;;  %v1980_v14 = vld [vmem:[%s5746_s15 + $0x20] sm:$0xff]  ;;  %v1981_v15 = vld [vmem:[%s5746_s15 + $0x28] sm:$0xff] }
 0x3b3   :  { %3825 = vmatmul.mubr.msk.f32.vlgmr.msra.gmra.mrb[18].mxu0 %vm919_vm3, %v916_v18  ;;  %v917_v20 = vmul.f32 %v916_v18, %v910_v8  ;;  %v1259_v8 = vld [vmem:[%s5740_s9 + $0x20] sm:$0xff]  ;;  %v1266_v18 = vld [vmem:[%s5740_s9 + $0x58] sm:$0xff] }
 0x3b4   :  { %3828 = vmatpush3.msra.mxu0 %v747_v6  ;;  %3829 = vmatprep.mubr.msk.f32.mxu0 %vm4707_vm2, %v4708_v33  ;;  %v3245_v6 = vld [vmem:[%s5778_s0 + $0x18] sm:$0xff]  ;;  %v4386_v10 = vpack.c.bf16 %v1260_v9, %v1259_v8  ;;  %v1976_v8 = vld [vmem:[%s5746_s15] sm:$0xff]  ;;  %v1977_v9 = vld [vmem:[%s5746_s15 + $0x8] sm:$0xff] }
 0x3b5   :  { %v918_v21 = vsub.f32 %v730_v19, %v917_v20  ;;  %v3258_v19 = vld [vmem:[%s5740_s9 + $0xd0] sm:$0xff]  ;;  %v4398_v20 = vpack.c.bf16 %v1266_v18, %v1265_v17  ;;  %v5308_v11 = vpack.c.bf16 %v1977_v9, %v1976_v8  ;;  %v1983_v18 = vld [vmem:[%s5746_s15 + $0x38] sm:$0xff] }
 0x3b6   :  { %v1982_v17 = vld [vmem:[%s5746_s15 + $0x30] sm:$0xff] }
 0x3b7   :  { %3830 = vmatmul.mubr.msk.f32.vlgmr.msra.gmra.mrb[20].mxu0 %vm919_vm3, %v918_v21  ;;  %v3259_v21 = vld [vmem:[%s5740_s9 + $0xd8] sm:$0xff] }
 0x3b8   :  { %3840 = vmatprep.mubr.msk.f32.mxu0 %vm91_vm0, %v1086_v22  ;;  %v4430_v22 = vpack.c.bf16 %v3259_v21, %v3258_v19  ;;  %v5334_v19 = vpack.c.bf16 %v1983_v18, %v1982_v17  ;;  %v3276_v21 = vld [vmem:[%s5742_s11 + $0x58] sm:$0xff] }
 0x3ba   :  { %4431 = vmatprep.subr.bf16.mxu1 %v4430_v22 }
 0x3bb   :  { %4433 = vmatpush3.bf16.msra.mxu1 %v4430_v22 }
 0x3bc   :  { %4435 = vmatprep.subr.bf16.mxu1 %v4434_v28 }
 0x3bf   :  { %4437 = vmatpush3.bf16.msra.mxu1 %v4434_v28 }
 0x3c0   :  { %4439 = vmatprep.subr.bf16.mxu1 %v4438_v35 }
 0x3c3   :  { %4441 = vmatpush3.bf16.msra.mxu1 %v4438_v35 }
 0x486   :  { %v989_v44 = vpop.f32.mrb[18].mxu0 }
 0x487   :  { %v1069_v45 = vrot.slane %v989_v44, %v5156_v43  ;;  %v3826_v47 = vpop.f32.mrb[19].mxu0 }
 0x488   :  { %v1525_v47 = vld [vmem:[%s5742_s11] sm:$0xff] }
 0x489   :  { %v1070_v48 = vmul.f32 %v5086_v40, %v1069_v45  ;;  %v1071_v51 = vmul.f32 %v5084_v38, %v1069_v45  ;;  %v1072_v52 = vmul.f32 %v5098_v49, %v1069_v45  ;;  %v1073_v53 = vmul.f32 %v5094_v46, %v1069_v45  ;;  %v1087_v38 = vld [vmem:[%s5778_s0 + $0x8] sm:$0xff]  ;;  %v3244_v46 = vld [vmem:[%s5778_s0 + $0x10] sm:$0xff]  ;;  %v1255_v49 = vld [vmem:[%s5740_s9] sm:$0xff] }
 0x48a   :  { %v1062_v50 = vpop.f32.mrb[20].mxu0  ;;  %v4378_v3 = vpack.c.bf16 %v1256_v2, %v1255_v49  ;;  %v1441_v45 = vld [vmem:[%s5741_s10] sm:$0xff]  ;;  %v3269_v49 = vld [vmem:[%s5741_s10 + $0x10] sm:$0xff]  ;;  %v3270_v2 = vld [vmem:[%s5741_s10 + $0x18] sm:$0xff] }
 0x48b   :  { %v1077_v55 = vrot.slane %v1062_v50, %v5156_v43  ;;  %v3831_v56 = vpop.f32.mrb[21].mxu0  ;;  %v1527_v50 = vld [vmem:[%s5742_s11 + $0x10] sm:$0xff] }
 0x48c   :  { %v1530_v56 = vld [vmem:[%s5742_s11 + $0x28] sm:$0xff] }
 0x48d   :  { %v1078_v57 = vadd.f32 %v1077_v55, %v1070_v48  ;;  %v1079_v58 = vadd.f32 %v1077_v55, %v1071_v51  ;;  %v1080_v59 = vadd.f32 %v1077_v55, %v1072_v52  ;;  %v1081_v60 = vadd.f32 %v1077_v55, %v1073_v53  ;;  %v1526_v48 = vld [vmem:[%s5742_s11 + $0x8] sm:$0xff]  ;;  %v1528_v52 = vld [vmem:[%s5742_s11 + $0x18] sm:$0xff]  ;;  %v1529_v55 = vld [vmem:[%s5742_s11 + $0x20] sm:$0xff] }
 0x48e   :  { %v4446_v51 = vpack.c.bf16 %v1526_v48, %v1525_v47  ;;  %v4450_v53 = vpack.c.bf16 %v1528_v52, %v1527_v50  ;;  %v3292_v47 = vld [vmem:[%s5742_s11 + $0xa8] sm:$0xff]  ;;  %v3293_v50 = vld [vmem:[%s5742_s11 + $0xb0] sm:$0xff] }
 0x48f   :  { %v1082_v61 = vmax.f32 %v1078_v57, 0.0  ;;  %v1083_v62 = vmax.f32 %v1079_v58, 0.0  ;;  %v1084_v63 = vmax.f32 %v1080_v59, 0.0  ;;  %v1085_v0 = vmax.f32 %v1081_v60, 0.0  ;;  %v1531_v58 = vld [vmem:[%s5742_s11 + $0x30] sm:$0xff]  ;;  %v1532_v59 = vld [vmem:[%s5742_s11 + $0x38] sm:$0xff] }
 0x490   :  { %4447 = vmatprep.subr.bf16.mxu1 %v4446_v51  ;;  %v4454_v57 = vpack.c.bf16 %v1530_v56, %v1529_v55  ;;  %v4458_v60 = vpack.c.bf16 %v1532_v59, %v1531_v58  ;;  %v1985_v55 = vld [vmem:[%s5746_s15 + $0x48] sm:$0xff]  ;;  %v1987_v58 = vld [vmem:[%s5746_s15 + $0x58] sm:$0xff] }
 0x491   :  { %v4362_v1 = vpack.c.bf16 %v1083_v62, %v1082_v61  ;;  %v4366_v40 = vpack.c.bf16 %v1085_v0, %v1084_v63 }
 0x493   :  { %4363 = vmatprep.subr.bf16.mxu0 %v4362_v1 }
 0x494   :  { %4365 = vmatpush3.bf16.msra.mxu0 %v4362_v1 }
 0x495   :  { %4367 = vmatprep.subr.bf16.mxu0 %v4366_v40 }
 0x498   :  { %4369 = vmatpush3.bf16.msra.mxu0 %v4366_v40 }
 0x499   :  { %4371 = vmatprep.subr.bf16.mxu0 %v4362_v1 }
 0x49b   :  { %3841 = vmatmul.mubr.msk.f32.vlgmr.msra.gmra.mrb[22].mxu0 %vm91_vm0, %v1087_v38 }
 0x49c   :  { %4373 = vmatpush3.bf16.msra.mxu0 %v4362_v1  ;;  %3851 = vmatprep.mubr.msk.f32.mxu0 %vm91_vm0, %v3244_v46  ;;  %v1442_v46 = vld [vmem:[%s5741_s10 + $0x8] sm:$0xff] }
 0x49d   :  { %4375 = vmatprep.subr.bf16.mxu0 %v4366_v40 }
 0x4a0   :  { %4377 = vmatpush3.bf16.msra.mxu0 %v4366_v40 }
 0x4a1   :  { %4379 = vmatprep.subr.bf16.mxu0 %v4378_v3 }
 0x4a3   :  { %3852 = vmatmul.mubr.msk.f32.vlgmr.msra.gmra.mrb[24].mxu0 %vm91_vm0, %v3245_v6  ;;  %v3274_v6 = vld [vmem:[%s5742_s11 + $0x48] sm:$0xff] }
 0x4a4   :  { %4381 = vmatpush3.bf16.msra.mxu0 %v4378_v3  ;;  %v3283_v3 = vld [vmem:[%s5741_s10 + $0x20] sm:$0xff] }
 0x4a5   :  { %4383 = vmatprep.subr.bf16.mxu0 %v4382_v7 }
 0x4a8   :  { %4385 = vmatpush3.bf16.msra.mxu0 %v4382_v7  ;;  %v4466_v7 = vpack.c.bf16 %v3274_v6, %v3273_v5 }
 0x4a9   :  { %4387 = vmatprep.subr.bf16.mxu0 %v4386_v10 }
 0x4ac   :  { %4389 = vmatpush3.bf16.msra.mxu0 %v4386_v10  ;;  %v1978_v10 = vld [vmem:[%s5746_s15 + $0x10] sm:$0xff] }
 0x4ad   :  { %4391 = vmatprep.subr.bf16.mxu0 %v4390_v13 }
 0x4b0   :  { %4393 = vmatpush3.bf16.msra.mxu0 %v4390_v13  ;;  %v5314_v13 = vpack.c.bf16 %v1979_v12, %v1978_v10 }
 0x4b1   :  { %4395 = vmatprep.subr.bf16.mxu0 %v4394_v16 }
 0x4b4   :  { %4397 = vmatpush3.bf16.msra.mxu0 %v4394_v16  ;;  %v5324_v16 = vpack.c.bf16 %v1981_v15, %v1980_v14 }
 0x4b5   :  { %4399 = vmatprep.subr.bf16.mxu0 %v4398_v20 }
 0x4b8   :  { %4401 = vmatpush3.bf16.msra.mxu0 %v4398_v20  ;;  %v3275_v20 = vld [vmem:[%s5742_s11 + $0x50] sm:$0xff] }
 0x4b9   :  { %4403 = vmatprep.subr.bf16.mxu0 %v4402_v26  ;;  %v4470_v24 = vpack.c.bf16 %v3276_v21, %v3275_v20  ;;  %v1993_v20 = vld [vmem:[%s5747_s16 + $0x8] sm:$0xff] }
 0x4bc   :  { %4405 = vmatpush3.bf16.msra.mxu0 %v4402_v26  ;;  %v3278_v26 = vld [vmem:[%s5742_s11 + $0x68] sm:$0xff] }
 0x4bd   :  { %4407 = vmatprep.subr.bf16.mxu0 %v4406_v32  ;;  %v4474_v28 = vpack.c.bf16 %v3278_v26, %v3277_v25 }
 0x4c0   :  { %4409 = vmatpush3.bf16.msra.mxu0 %v4406_v32 }
 0x56e   :  { %v3842_v36 = vpop.f32.mrb[22].mxu0 }
 0x56f   :  { %v1160_v37 = vpop.f32.mrb[23].mxu0 }
 0x576   :  { %v3853_v39 = vpop.f32.mrb[24].mxu0 }
 0x577   :  { %v1254_v41 = vmax.f32 %v3842_v36, %v3853_v39  ;;  %v1244_v42 = vpop.f32.mrb[25].mxu0  ;;  %v3287_v36 = vld [vmem:[%s5742_s11 + $0x80] sm:$0xff] }
 0x578   :  { %v1253_v44 = vmax.f32 %v1160_v37, %v1244_v42  ;;  %v3288_v37 = vld [vmem:[%s5742_s11 + $0x88] sm:$0xff]  ;;  %v3290_v42 = vld [vmem:[%s5742_s11 + $0x98] sm:$0xff] }
 0x579   :  { %v4486_v39 = vpack.c.bf16 %v3288_v37, %v3287_v36 }
 0x57a   :  { %3886 = vmatprep.mubr.f32.mxu0 %v1253_v44  ;;  %3921 = vmatprep.mubr.f32.mxu1 %v1253_v44 }
 0x57b   :  { %3887 = vmatmul.mubr.f32.vlgmr.msra.gmra.mrb[26].mxu0 %v1254_v41  ;;  %3922 = vmatmul.mubr.f32.vlgmr.msra.gmra.mrb[6].mxu1 %v1254_v41  ;;  %v3289_v41 = vld [vmem:[%s5742_s11 + $0x90] sm:$0xff] }
 0x57c   :  { %3928 = vmatprep.mubr.msk.f32.mxu0 %vm1443_vm4, %v1441_v45  ;;  %4449 = vmatpush3.bf16.msra.mxu1 %v4446_v51  ;;  %v4490_v44 = vpack.c.bf16 %v3290_v42, %v3289_v41  ;;  %v3291_v45 = vld [vmem:[%s5742_s11 + $0xa0] sm:$0xff]  ;;  %v3294_v51 = vld [vmem:[%s5742_s11 + $0xb8] sm:$0xff]  ;;  %v3303_v41 = vld [vmem:[%s5749_s18 + $0x88] sm:$0xff] }
 0x57d   :  { %4451 = vmatprep.subr.bf16.mxu1 %v4450_v53  ;;  %v4494_v48 = vpack.c.bf16 %v3292_v47, %v3291_v45  ;;  %v4498_v52 = vpack.c.bf16 %v3294_v51, %v3293_v50  ;;  %v3305_v45 = vld [vmem:[%s5749_s18 + $0x98] sm:$0xff]  ;;  %v3307_v50 = vld [vmem:[%s5749_s18 + $0xa8] sm:$0xff] }
 0x580   :  { %4453 = vmatpush3.bf16.msra.mxu1 %v4450_v53  ;;  %v1984_v53 = vld [vmem:[%s5746_s15 + $0x40] sm:$0xff] }
 0x581   :  { %4455 = vmatprep.subr.bf16.mxu1 %v4454_v57  ;;  %v4515_v56 = vpack.c.bf16 %v1985_v55, %v1984_v53  ;;  %v3309_v53 = vld [vmem:[%s5749_s18 + $0xb8] sm:$0xff] }
 0x584   :  { %4457 = vmatpush3.bf16.msra.mxu1 %v4454_v57  ;;  %v1986_v57 = vld [vmem:[%s5746_s15 + $0x50] sm:$0xff] }
 0x585   :  { %4459 = vmatprep.subr.bf16.mxu1 %v4458_v60  ;;  %v4518_v59 = vpack.c.bf16 %v1987_v58, %v1986_v57  ;;  %v3311_v57 = vld [vmem:[%s5749_s18 + $0xc8] sm:$0xff] }
 0x588   :  { %4461 = vmatpush3.bf16.msra.mxu1 %v4458_v60  ;;  %v1988_v60 = vld [vmem:[%s5746_s15 + $0x60] sm:$0xff] }
 0x589   :  { %4467 = vmatprep.subr.bf16.mxu1 %v4466_v7 }
 0x64e   :  { %v3888_v61 = vpop.f32.mrb[26].mxu0  ;;  %v3923_v62 = vpop.f32.mrb[6].mxu1 }
 0x64f   :  { %v1439_v63 = vmax.f32 %v3888_v61, %v3923_v62  ;;  %v1337_v0 = vpop.f32.mrb[27].mxu0  ;;  %v1429_v1 = vpop.f32.mrb[7].mxu1  ;;  %v1989_v61 = vld [vmem:[%s5746_s15 + $0x68] sm:$0xff] }
 0x650   :  { %v1438_v40 = vmax.f32 %v1337_v0, %v1429_v1  ;;  %v4521_v62 = vpack.c.bf16 %v1989_v61, %v1988_v60  ;;  %v1991_v0 = vld [vmem:[%s5746_s15 + $0x78] sm:$0xff] }
 0x651   :  { %v3313_v60 = vld [vmem:[%s5749_s18 + $0xd8] sm:$0xff] }
 0x652   :  { %v4442_v38 = vpack.c.bf16 %v1439_v63, %v1438_v40  ;;  %v1990_v63 = vld [vmem:[%s5746_s15 + $0x70] sm:$0xff]  ;;  %v3268_v40 = vld [vmem:[%s5743_s12] ss:$0 sm:$0xff] }
 0x653   :  { %v4524_v1 = vpack.c.bf16 %v1991_v0, %v1990_v63 }
 0x654   :  { %4443 = vmatprep.subr.bf16.mxu0 %v4442_v38 }
 0x655   :  { %4445 = vmatpush3.bf16.msra.mxu0 %v4442_v38 }
 0x656   :  { %4463 = vmatprep.subr.bf16.mxu0 %v4442_v38 }
 0x658   :  { %3929 = vmatmul.mubr.msk.f32.vlgmr.msra.gmra.mrb[28].mxu0 %vm1443_vm4, %v1442_v46 }
 0x659   :  { %4465 = vmatpush3.bf16.msra.mxu0 %v4442_v38  ;;  %3954 = vmatprep.mubr.msk.f32.mxu0 %vm1443_vm4, %v3269_v49 }
 0x65a   :  { %4483 = vmatprep.subr.bf16.mxu0 %v4442_v38 }
 0x65c   :  { %3955 = vmatmul.mubr.msk.f32.vlgmr.msra.gmra.mrb[30].mxu0 %vm1443_vm4, %v3270_v2 }
 0x65d   :  { %4485 = vmatpush3.bf16.msra.mxu0 %v4442_v38  ;;  %3980 = vmatprep.mubr.msk.f32.mxu0 %vm1443_vm4, %v3283_v3 }
 0x65e   :  { %4502 = vmatprep.subr.bf16.mxu0 %v4706_v54 }
 0x660   :  { %3981 = vmatmul.mubr.msk.f32.vlgmr.msra.gmra.mrb[32].mxu0 %vm1443_vm4, %v3284_v4 }
 0x661   :  { %4034 = vmatprep.mubr.msk.f32.mxu0 %vm4707_vm2, %v4708_v33  ;;  %4504 = vmatpush3.bf16.msra.mxu0 %v5308_v11 }
 0x662   :  { %4505 = vmatprep.subr.bf16.mxu0 %v4706_v54 }
 0x665   :  { %4507 = vmatpush3.bf16.msra.mxu0 %v5314_v13 }
 0x666   :  { %4508 = vmatprep.subr.bf16.mxu0 %v4706_v54 }
 0x669   :  { %4510 = vmatpush3.bf16.msra.mxu0 %v5324_v16 }
 0x66a   :  { %4511 = vmatprep.subr.bf16.mxu0 %v4706_v54 }
 0x66d   :  { %4513 = vmatpush3.bf16.msra.mxu0 %v5334_v19 }
 0x66e   :  { %4514 = vmatprep.subr.bf16.mxu0 %v4706_v54 }
 0x671   :  { %4516 = vmatpush3.bf16.msra.mxu0 %v4515_v56 }
 0x672   :  { %4517 = vmatprep.subr.bf16.mxu0 %v4706_v54 }
 0x675   :  { %4519 = vmatpush3.bf16.msra.mxu0 %v4518_v59 }
 0x676   :  { %4520 = vmatprep.subr.bf16.mxu0 %v4706_v54 }
 0x679   :  { %4522 = vmatpush3.bf16.msra.mxu0 %v4521_v62 }
 0x67a   :  { %4523 = vmatprep.subr.bf16.mxu0 %v4706_v54 }
 0x67d   :  { %4525 = vmatpush3.bf16.msra.mxu0 %v4524_v1 }
 0x67e   :  { %4526 = vmatprep.subr.bf16.mxu0 %v4706_v54 }
 0x72b   :  { %v3930_v22 = vpop.f32.mrb[28].mxu0 }
 0x72c   :  { %v1516_v23 = vpop.f32.mrb[29].mxu0 }
 0x72d   :  { %3947 = vmatprep.mubr.msk.f32.mxu1 %vm197_vm1, %v1516_v23 }
 0x72e   :  { %3948 = vmatmul.mubr.msk.f32.vlgmr.msra.gmra.mrb[8].mxu1 %vm197_vm1, %v3930_v22 }
 0x72f   :  { %4469 = vmatpush3.bf16.msra.mxu1 %v4466_v7  ;;  %v3956_v27 = vpop.f32.mrb[30].mxu0 }
 0x730   :  { %4471 = vmatprep.subr.bf16.mxu1 %v4470_v24  ;;  %v1697_v29 = vpop.f32.mrb[31].mxu0 }
 0x731   :  { %3973 = vmatprep.mubr.msk.f32.mxu1 %vm197_vm1, %v1697_v29 }
 0x733   :  { %4473 = vmatpush3.bf16.msra.mxu1 %v4470_v24  ;;  %v3982_v32 = vpop.f32.mrb[32].mxu0 }
 0x734   :  { %4475 = vmatprep.subr.bf16.mxu1 %v4474_v28  ;;  %v1873_v35 = vpop.f32.mrb[33].mxu0 }
 0x737   :  { %4477 = vmatpush3.bf16.msra.mxu1 %v4474_v28 }
 0x738   :  { %4479 = vmatprep.subr.bf16.mxu1 %v4478_v34 }
 0x73b   :  { %4481 = vmatpush3.bf16.msra.mxu1 %v4478_v34 }
 0x73c   :  { %4487 = vmatprep.subr.bf16.mxu1 %v4486_v39 }
 0x73e   :  { %3974 = vmatmul.mubr.msk.f32.vlgmr.msra.gmra.mrb[8].mxu1 %vm197_vm1, %v3956_v27 }
 0x73f   :  { %4489 = vmatpush3.bf16.msra.mxu1 %v4486_v39  ;;  %3999 = vmatprep.mubr.msk.f32.mxu1 %vm197_vm1, %v1873_v35  ;;  %v1975_v35 = vld [vmem:[%s5745_s14] sm:$0x1] }
 0x740   :  { %4491 = vmatprep.subr.bf16.mxu1 %v4490_v44  ;;  %v3302_v39 = vld [vmem:[%s5749_s18 + $0x80] sm:$0xff] }
 0x741   :  { %v4587_v42 = vpack.c.bf16 %v3303_v41, %v3302_v39  ;;  %v3317_v39 = vld [vmem:[%s5749_s18 + $0xf8] sm:$0xff] }
 0x743   :  { %4493 = vmatpush3.bf16.msra.mxu1 %v4490_v44  ;;  %v3304_v44 = vld [vmem:[%s5749_s18 + $0x90] sm:$0xff] }
 0x744   :  { %4495 = vmatprep.subr.bf16.mxu1 %v4494_v48  ;;  %v4590_v47 = vpack.c.bf16 %v3305_v45, %v3304_v44 }
 0x747   :  { %4497 = vmatpush3.bf16.msra.mxu1 %v4494_v48  ;;  %v3306_v48 = vld [vmem:[%s5749_s18 + $0xa0] sm:$0xff] }
 0x748   :  { %4499 = vmatprep.subr.bf16.mxu1 %v4498_v52  ;;  %v4593_v51 = vpack.c.bf16 %v3307_v50, %v3306_v48 }
 0x74b   :  { %4501 = vmatpush3.bf16.msra.mxu1 %v4498_v52  ;;  %v3308_v52 = vld [vmem:[%s5749_s18 + $0xb0] sm:$0xff] }
 0x74c   :  { %4550 = vmatprep.subr.bf16.mxu1 %v4706_v54  ;;  %v4596_v55 = vpack.c.bf16 %v3309_v53, %v3308_v52  ;;  %v2718_v52 = vld [vmem:[%s5751_s20] sm:$0xff]  ;;  %v2719_v53 = vld [vmem:[%s5751_s20 + $0x8] sm:$0xff] }
 0x74e   :  { %4000 = vmatmul.mubr.msk.f32.vlgmr.msra.gmra.mrb[8].mxu1 %vm197_vm1, %v3982_v32 }
 0x74f   :  { %4076 = vmatprep.mubr.msk.f32.mxu1 %vm4707_vm2, %v4708_v33 }
 0x821   :  { %v4001_v38 = vpop.f32.mrb[8].mxu1 }
 0x822   :  { %v5421_v46 = vadd.f32 %v4001_v38, %v3268_v40  ;;  %v1963_v49 = vpop.f32.mrb[9].mxu1 }
 0x823   :  { %v5423_v2 = vadd.f32 %v3268_v40, %v1963_v49 }
 0x824   :  { %v2002_v10 = vmul.f32 %v5421_v46, %v5421_v46 }
 0x825   :  { %v1994_v3 = vadd.f32 %v5423_v2, %v5421_v46  ;;  %v2001_v12 = vmul.f32 %v5423_v2, %v5423_v2 }
 0x827   :  { %v1995_v4 = vrot.slane %v1994_v3, 4  ;;  %v2003_v14 = vadd.f32 %v2002_v10, %v2001_v12  ;;  %v3300_v10 = vld [vmem:[%s5748_s17 + $0x8] sm:$0xff] }
 0x829   :  { %v1996_v5 = vadd.f32 %v1995_v4, %v1994_v3  ;;  %v2004_v15 = vrot.slane %v2003_v14, 4 }
 0x82b   :  { %v1997_v6 = vrot.slane %v1996_v5, 2 }
 0x82d   :  { %v1998_v7 = vadd.f32 %v1997_v6, %v1996_v5 }
 0x82f   :  { %v1999_v8 = vrot.slane %v1998_v7, 1 }
 0x831   :  { %v2000_v9 = vadd.f32 %v1999_v8, %v1998_v7 }
 0x833   :  { %4035 = vmatmul.mubr.f32.vlgmr.msra.gmra.mrb[34].mxu0 %v2000_v9  ;;  %v2319_v9 = vld [vmem:[%s5748_s17] sm:$0xff] }
 0x834   :  { %4528 = vmatpush3.bf16.msra.mxu0 %v5308_v11  ;;  %4069 = vmatprep.mubr.msk.f32.mxu0 %vm4707_vm2, %v4708_v33  ;;  %v2005_v11 = vadd.f32 %v2004_v15, %v2003_v14  ;;  %v2471_v14 = vld [vmem:[%s5749_s18 + $0x10] sm:$0xff]  ;;  %v2472_v15 = vld [vmem:[%s5749_s18 + $0x18] sm:$0xff] }
 0x835   :  { %4529 = vmatprep.subr.bf16.mxu0 %v4706_v54 }
 0x836   :  { %v2006_v17 = vrot.slane %v2005_v11, 2 }
 0x838   :  { %4531 = vmatpush3.bf16.msra.mxu0 %v5314_v13  ;;  %v2007_v13 = vadd.f32 %v2006_v17, %v2005_v11  ;;  %v4566_v11 = vpack.c.bf16 %v2472_v15, %v2471_v14  ;;  %v2473_v17 = vld [vmem:[%s5749_s18 + $0x20] sm:$0xff] }
 0x839   :  { %4532 = vmatprep.subr.bf16.mxu0 %v4706_v54  ;;  %v3327_v15 = vld [vmem:[%s5751_s20 + $0x60] sm:$0xff] }
 0x83c   :  { %4534 = vmatpush3.bf16.msra.mxu0 %v5324_v16  ;;  %v2008_v16 = vrot.slane %v2007_v13, 1 }
 0x83d   :  { %4535 = vmatprep.subr.bf16.mxu0 %v4706_v54 }
 0x83e   :  { %v2009_v18 = vadd.f32 %v2008_v16, %v2007_v13  ;;  %v2474_v13 = vld [vmem:[%s5749_s18 + $0x28] sm:$0xff] }
 0x83f   :  { %v4569_v16 = vpack.c.bf16 %v2474_v13, %v2473_v17 }
 0x840   :  { %4537 = vmatpush3.bf16.msra.mxu0 %v5334_v19  ;;  %v1992_v19 = vld [vmem:[%s5747_s16] sm:$0xff] }
 0x841   :  { %4538 = vmatprep.subr.bf16.mxu0 %v4706_v54  ;;  %v4551_v21 = vpack.c.bf16 %v1993_v20, %v1992_v19  ;;  %v2476_v19 = vld [vmem:[%s5749_s18 + $0x38] sm:$0xff] }
 0x843   :  { %4552 = vmatpush3.bf16.msra.mxu1 %v4551_v21 }
 0x844   :  { %4540 = vmatpush3.bf16.msra.mxu0 %v4515_v56  ;;  %4553 = vmatprep.subr.bf16.mxu1 %v4706_v54  ;;  %v3310_v56 = vld [vmem:[%s5749_s18 + $0xc0] sm:$0xff] }
 0x845   :  { %4541 = vmatprep.subr.bf16.mxu0 %v4706_v54  ;;  %v4599_v58 = vpack.c.bf16 %v3311_v57, %v3310_v56 }
 0x848   :  { %4543 = vmatpush3.bf16.msra.mxu0 %v4518_v59  ;;  %v3312_v59 = vld [vmem:[%s5749_s18 + $0xd0] sm:$0xff] }
 0x849   :  { %4544 = vmatprep.subr.bf16.mxu0 %v4706_v54  ;;  %v4602_v61 = vpack.c.bf16 %v3313_v60, %v3312_v59  ;;  %v3321_v59 = vld [vmem:[%s5750_s19 + $0x8] sm:$0xff]  ;;  %v4611_v60 = vpack.c.bf16 %v2719_v53, %v2718_v52 }
 0x84c   :  { %4546 = vmatpush3.bf16.msra.mxu0 %v4521_v62 }
 0x84d   :  { %4547 = vmatprep.subr.bf16.mxu0 %v4706_v54 }
 0x850   :  { %4549 = vmatpush3.bf16.msra.mxu0 %v4524_v1 }
 0x851   :  { %4586 = vmatprep.subr.bf16.mxu0 %v4706_v54 }
 0x853   :  { %4070 = vmatmul.mubr.f32.vlgmr.msra.gmra.mrb[36].mxu0 %v2009_v18  ;;  %v2475_v18 = vld [vmem:[%s5749_s18 + $0x30] sm:$0xff] }
 0x854   :  { %4167 = vmatprep.mubr.msk.f32.mxu0 %vm4707_vm2, %v4708_v33  ;;  %4588 = vmatpush3.bf16.msra.mxu0 %v4587_v42  ;;  %v4572_v20 = vpack.c.bf16 %v2476_v19, %v2475_v18  ;;  %v3329_v18 = vld [vmem:[%s5751_s20 + $0x70] sm:$0xff]  ;;  %v3330_v19 = vld [vmem:[%s5751_s20 + $0x78] sm:$0xff] }
 0x855   :  { %4589 = vmatprep.subr.bf16.mxu0 %v4706_v54 }
 0x858   :  { %4591 = vmatpush3.bf16.msra.mxu0 %v4590_v47 }
 0x859   :  { %4592 = vmatprep.subr.bf16.mxu0 %v4706_v54 }
 0x85c   :  { %4594 = vmatpush3.bf16.msra.mxu0 %v4593_v51 }
 0x85d   :  { %4595 = vmatprep.subr.bf16.mxu0 %v4706_v54 }
 0x860   :  { %4597 = vmatpush3.bf16.msra.mxu0 %v4596_v55 }
 0x861   :  { %4598 = vmatprep.subr.bf16.mxu0 %v4706_v54 }
 0x864   :  { %4600 = vmatpush3.bf16.msra.mxu0 %v4599_v58  ;;  %v2644_v58 = vld [vmem:[%s5750_s19] sm:$0xff] }
 0x865   :  { %4601 = vmatprep.subr.bf16.mxu0 %v4706_v54 }
 0x868   :  { %4603 = vmatpush3.bf16.msra.mxu0 %v4602_v61  ;;  %v2720_v61 = vld [vmem:[%s5751_s20 + $0x10] sm:$0xff] }
 0x869   :  { %4604 = vmatprep.subr.bf16.mxu0 %v4706_v54 }
 0x906   :  { %v2076_v22 = vpop.f32.mrb[34].mxu0 }
 0x907   :  { %v4036_v23 = vpop.f32.mrb[35].mxu0  ;;  %v2150_v24 = vmul.f32 0.0078125, %v2076_v22  ;;  %v2478_v22 = vld [vmem:[%s5749_s18 + $0x48] sm:$0xff] }
 0x909   :  { %v2152_v26 = vmul.f32 %v2150_v24, %v2150_v24 }
 0x926   :  { %v2146_v25 = vpop.f32.mrb[36].mxu0 }
 0x927   :  { %v2151_v27 = vmul.f32 0.0078125, %v2146_v25  ;;  %v4071_v28 = vpop.f32.mrb[37].mxu0  ;;  %v2480_v25 = vld [vmem:[%s5749_s18 + $0x58] sm:$0xff] }
 0x928   :  { %v2482_v28 = vld [vmem:[%s5749_s18 + $0x68] sm:$0xff] }
 0x929   :  { %v2153_v29 = vsub.f32 %v2151_v27, %v2152_v26  ;;  %v2481_v27 = vld [vmem:[%s5749_s18 + $0x60] sm:$0xff] }
 0x92b   :  { %v2154_v30 = vadd.f32 1e-05, %v2153_v29  ;;  %v3314_v29 = vld [vmem:[%s5749_s18 + $0xe0] sm:$0xff] }
 0x92d   :  { %4678 = vrsqrt.f32 %v2154_v30  ;;  %v4581_v30 = vpack.c.bf16 %v2482_v28, %v2481_v27  ;;  %v3338_v27 = vld [vmem:[%s5751_s20 + $0xa0] sm:$0xff]  ;;  %v3339_v28 = vld [vmem:[%s5751_s20 + $0xa8] sm:$0xff] }
 0x937   :  { %v4679_v32 = vpop.eup %4678 }
 0x938   :  { %v2156_v34 = vmul.f32 %v4679_v32, %v1974_v31  ;;  %v3315_v31 = vld [vmem:[%s5749_s18 + $0xe8] sm:$0xff] }
 0x939   :  { %v4605_v32 = vpack.c.bf16 %v3315_v31, %v3314_v29  ;;  %v4641_v29 = vpack.c.bf16 %v3339_v28, %v3338_v27 }
 0x93a   :  { %4077 = vmatmul.mubr.msk.f32.vlgmr.msra.gmra.mrb[10].mxu1 %vm1443_vm4, %v2156_v34  ;;  %v2157_v36 = vmul.f32 %v2156_v34, %v2150_v24  ;;  %v2479_v24 = vld [vmem:[%s5749_s18 + $0x50] sm:$0xff] }
 0x93b   :  { %4555 = vmatpush3.bf16.msra.mxu1 %v4551_v21  ;;  %4083 = vmatprep.mubr.msk.f32.mxu1 %vm4707_vm2, %v4708_v33  ;;  %v2477_v21 = vld [vmem:[%s5749_s18 + $0x40] sm:$0xff]  ;;  %v4578_v26 = vpack.c.bf16 %v2480_v25, %v2479_v24  ;;  %v2483_v34 = vld [vmem:[%s5749_s18 + $0x70] sm:$0xff]  ;;  %v3337_v25 = vld [vmem:[%s5751_s20 + $0x98] sm:$0xff] }
 0x93c   :  { %v2158_v37 = vsub.f32 %v1975_v35, %v2157_v36  ;;  %4556 = vmatprep.subr.bf16.mxu1 %v4706_v54  ;;  %v4575_v23 = vpack.c.bf16 %v2478_v22, %v2477_v21  ;;  %4606 = vmatpush3.bf16.msra.mxu0 %v4605_v32  ;;  %v2484_v35 = vld [vmem:[%s5749_s18 + $0x78] sm:$0xff]  ;;  %v3316_v36 = vld [vmem:[%s5749_s18 + $0xf0] sm:$0xff]  ;;  %v3334_v21 = vld [vmem:[%s5751_s20 + $0x80] sm:$0xff] }
 0x93d   :  { %4607 = vmatprep.subr.bf16.mxu0 %v4706_v54  ;;  %v4608_v41 = vpack.c.bf16 %v3317_v39, %v3316_v36  ;;  %v3335_v22 = vld [vmem:[%s5751_s20 + $0x88] sm:$0xff]  ;;  %v3336_v24 = vld [vmem:[%s5751_s20 + $0x90] sm:$0xff]  ;;  %v3320_v32 = vld [vmem:[%s5752_s21] ss:$0 sm:$0xff] }
 0x93e   :  { %4084 = vmatmul.mubr.msk.f32.vlgmr.msra.gmra.mrb[12].mxu1 %vm1443_vm4, %v2158_v37  ;;  %v4584_v37 = vpack.c.bf16 %v2484_v35, %v2483_v34 }
 0x93f   :  { %4090 = vmatprep.mubr.msk.f32.mxu1 %vm4707_vm2, %v4708_v33 }
 0x940   :  { %4609 = vmatpush3.bf16.msra.mxu0 %v4608_v41 }
 0x941   :  { %4194 = vmatprep.subr.mxu0 %v4708_v33 }
 0xa0d   :  { %v2228_v62 = vpop.f32.mrb[10].mxu1 }
 0xa0e   :  { %v2308_v63 = vrot.slane %v2228_v62, %v5156_v43  ;;  %v4078_v0 = vpop.f32.mrb[11].mxu1  ;;  %v2721_v62 = vld [vmem:[%s5751_s20 + $0x18] sm:$0xff] }
 0xa0f   :  { %v4614_v0 = vpack.c.bf16 %v2721_v62, %v2720_v61 }
 0xa10   :  { %v2309_v40 = vmul.f32 %v5423_v2, %v2308_v63  ;;  %v2310_v38 = vmul.f32 %v5421_v46, %v2308_v63  ;;  %v2469_v2 = vld [vmem:[%s5749_s18] sm:$0xff]  ;;  %v2470_v46 = vld [vmem:[%s5749_s18 + $0x8] sm:$0xff]  ;;  %v3332_v63 = vld [vmem:[%s5750_s19 + $0x10] sm:$0xff] }
 0xa11   :  { %v2301_v1 = vpop.f32.mrb[12].mxu1  ;;  %v4563_v12 = vpack.c.bf16 %v2470_v46, %v2469_v2 }
 0xa12   :  { %v2314_v49 = vrot.slane %v2301_v1, %v5156_v43  ;;  %v4085_v3 = vpop.f32.mrb[13].mxu1  ;;  %v2722_v1 = vld [vmem:[%s5751_s20 + $0x20] sm:$0xff] }
 0xa13   :  { %v2725_v3 = vld [vmem:[%s5751_s20 + $0x38] sm:$0xff] }
 0xa14   :  { %v2315_v4 = vadd.f32 %v2314_v49, %v2309_v40  ;;  %v2316_v5 = vadd.f32 %v2314_v49, %v2310_v38  ;;  %v2723_v40 = vld [vmem:[%s5751_s20 + $0x28] sm:$0xff]  ;;  %v2724_v49 = vld [vmem:[%s5751_s20 + $0x30] sm:$0xff] }
 0xa15   :  { %v4617_v38 = vpack.c.bf16 %v2723_v40, %v2722_v1 }
 0xa16   :  { %v2317_v6 = vmax.f32 %v2315_v4, 0.0  ;;  %v2318_v7 = vmax.f32 %v2316_v5, 0.0  ;;  %v4620_v4 = vpack.c.bf16 %v2725_v3, %v2724_v49  ;;  %v3323_v5 = vld [vmem:[%s5751_s20 + $0x40] sm:$0xff] }
 0xa18   :  { %v4557_v8 = vpack.c.bf16 %v2318_v7, %v2317_v6  ;;  %v3324_v6 = vld [vmem:[%s5751_s20 + $0x48] sm:$0xff] }
 0xa19   :  { %v4623_v7 = vpack.c.bf16 %v3324_v6, %v3323_v5 }
 0xa1a   :  { %4558 = vmatpush3.bf16.msra.mxu1 %v4557_v8 }
 0xa1b   :  { %4559 = vmatprep.subr.bf16.mxu1 %v4706_v54 }
 0xa1d   :  { %4091 = vmatmul.mubr.msk.f32.vlgmr.msra.gmra.mrb[14].mxu1 %vm1443_vm4, %v2319_v9  ;;  %v3326_v9 = vld [vmem:[%s5751_s20 + $0x58] sm:$0xff] }
 0xa1e   :  { %4561 = vmatpush3.bf16.msra.mxu1 %v4557_v8  ;;  %4097 = vmatprep.mubr.msk.f32.mxu1 %vm4707_vm2, %v4708_v33  ;;  %v3325_v8 = vld [vmem:[%s5751_s20 + $0x50] sm:$0xff] }
 0xa1f   :  { %4562 = vmatprep.subr.bf16.mxu1 %v4706_v54 }
 0xa21   :  { %4098 = vmatmul.mubr.msk.f32.vlgmr.msra.gmra.mrb[16].mxu1 %vm1443_vm4, %v3300_v10 }
 0xa22   :  { %4564 = vmatpush3.bf16.msra.mxu1 %v4563_v12  ;;  %4132 = vmatprep.mubr.msk.f32.mxu1 %vm4707_vm2, %v4708_v33  ;;  %v4626_v12 = vpack.c.bf16 %v3326_v9, %v3325_v8 }
 0xa23   :  { %4565 = vmatprep.subr.bf16.mxu1 %v4706_v54 }
 0xa26   :  { %4567 = vmatpush3.bf16.msra.mxu1 %v4566_v11  ;;  %v3328_v11 = vld [vmem:[%s5751_s20 + $0x68] sm:$0xff] }
 0xa27   :  { %4568 = vmatprep.subr.bf16.mxu1 %v4706_v54  ;;  %v4629_v13 = vpack.c.bf16 %v3328_v11, %v3327_v15 }
 0xa2a   :  { %4570 = vmatpush3.bf16.msra.mxu1 %v4569_v16 }
 0xa2b   :  { %4571 = vmatprep.subr.bf16.mxu1 %v4706_v54 }
 0xa2e   :  { %4573 = vmatpush3.bf16.msra.mxu1 %v4572_v20  ;;  %v4632_v20 = vpack.c.bf16 %v3330_v19, %v3329_v18 }
 0xa2f   :  { %4574 = vmatprep.subr.bf16.mxu1 %v4706_v54 }
 0xa32   :  { %4576 = vmatpush3.bf16.msra.mxu1 %v4575_v23  ;;  %v4635_v23 = vpack.c.bf16 %v3335_v22, %v3334_v21 }
 0xa33   :  { %4577 = vmatprep.subr.bf16.mxu1 %v4706_v54 }
 0xa36   :  { %4579 = vmatpush3.bf16.msra.mxu1 %v4578_v26  ;;  %v4638_v26 = vpack.c.bf16 %v3337_v25, %v3336_v24 }
 0xa37   :  { %4580 = vmatprep.subr.bf16.mxu1 %v4706_v54 }
 0xa3a   :  { %4582 = vmatpush3.bf16.msra.mxu1 %v4581_v30  ;;  %v3340_v30 = vld [vmem:[%s5751_s20 + $0xb0] sm:$0xff] }
 0xa3b   :  { %4583 = vmatprep.subr.bf16.mxu1 %v4706_v54 }
 0xa3e   :  { %4585 = vmatpush3.bf16.msra.mxu1 %v4584_v37 }
 0xa3f   :  { %4170 = vmatprep.subr.mxu1 %v4708_v33 }
 0xaf0   :  { %v2389_v42 = vpop.f32.mrb[14].mxu1 }
 0xaf1   :  { %v4092_v44 = vpop.f32.mrb[15].mxu1 }
 0xaf4   :  { %v2464_v45 = vpop.f32.mrb[16].mxu1 }
 0xaf5   :  { %v2468_v47 = vmax.f32 %v2389_v42, %v2464_v45  ;;  %v4099_v48 = vpop.f32.mrb[17].mxu1 }
 0xaf7   :  { %4133 = vmatmul.mubr.f32.vlgmr.msra.gmra.mrb[18].mxu1 %v2468_v47  ;;  %4168 = vmatmul.mubr.f32.vlgmr.msra.gmra.mrb[38].mxu0 %v2468_v47 }
 0xaf8   :  { %4172 = vmatprep.mubr.msk.f32.mxu1 %vm4707_vm2, %v4708_v33  ;;  %4196 = vmatprep.mubr.msk.f32.mxu0 %vm4707_vm2, %v4708_v33 }
 0xbca   :  { %v2551_v50 = vpop.f32.mrb[18].mxu1  ;;  %v2638_v51 = vpop.f32.mrb[38].mxu0 }
 0xbcb   :  { %v2642_v55 = vmax.f32 %v2551_v50, %v2638_v51  ;;  %v4134_v56 = vpop.f32.mrb[19].mxu1  ;;  %v4169_v57 = vpop.f32.mrb[39].mxu0 }
 0xbcd   :  { %4171 = vmatpush3.msra.mxu1 %v2642_v55  ;;  %4195 = vmatpush3.msra.mxu0 %v2642_v55 }
 0xbce   :  { %4173 = vmatmul.mubr.msk.f32.vlgmr.msra.gmra.mrb[20].mxu1 %vm919_vm3, %v2644_v58  ;;  %4218 = vmatprep.subr.mxu0 %v4708_v33 }
 0xbcf   :  { %4197 = vmatmul.mubr.msk.f32.vlgmr.msra.gmra.mrb[40].mxu0 %vm919_vm3, %v3321_v59  ;;  %4610 = vmatprep.subr.bf16.mxu1 %v4706_v54  ;;  %v4709_v59 = vmov 0  }
 0xbd0   :  { %4219 = vmatpush3.msra.mxu0 %v2642_v55  ;;  %4220 = vmatprep.mubr.msk.f32.mxu0 %vm4707_vm2, %v4708_v33 }
 0xbd1   :  { %4612 = vmatpush3.bf16.msra.mxu1 %v4611_v60  ;;  %4191 = vmatprep.mubr.msk.f32.mxu1 %vm4707_vm2, %v4708_v33 }
 0xbd2   :  { %4613 = vmatprep.subr.bf16.mxu1 %v4706_v54  ;;  %4674 = vset.pattern.permute.xlu1 %v4709_v59 }
 0xbd3   :  { %4221 = vmatmul.mubr.msk.f32.vlgmr.msra.gmra.mrb[42].mxu0 %vm919_vm3, %v3332_v63  ;;  %4675 = vset.pattern.permute.xlu0 %v4709_v59 }
 0xbd5   :  { %4615 = vmatpush3.bf16.msra.mxu1 %v4614_v0 }
 0xbd6   :  { %4616 = vmatprep.subr.bf16.mxu1 %v4706_v54 }
 0xbd9   :  { %4618 = vmatpush3.bf16.msra.mxu1 %v4617_v38  ;;  %v3122_v38 = vld [vmem:[#allocation2] sm:$0x1] }
 0xbda   :  { %4619 = vmatprep.subr.bf16.mxu1 %v4706_v54 }
 0xbdd   :  { %4621 = vmatpush3.bf16.msra.mxu1 %v4620_v4  ;;  %v3123_v4 = vld [vmem:[#allocation3] sm:$0x1] }
 0xbde   :  { %4622 = vmatprep.subr.bf16.mxu1 %v4706_v54 }
 0xca1   :  { %v2714_v2 = vpop.f32.mrb[20].mxu1 }
 0xca2   :  { %4192 = vmatmul.mubr.msk.f32.vlgmr.msra.gmra.mrb[22].mxu1 %vm197_vm1, %v2714_v2  ;;  %v4174_v46 = vpop.f32.mrb[21].mxu1  ;;  %v2877_v10 = vpop.f32.mrb[40].mxu0 }
 0xca3   :  { %4624 = vmatpush3.bf16.msra.mxu1 %v4623_v7  ;;  %4215 = vmatprep.mubr.msk.f32.mxu1 %vm4707_vm2, %v4708_v33  ;;  %v4198_v14 = vpop.f32.mrb[41].mxu0 }
 0xca4   :  { %4625 = vmatprep.subr.bf16.mxu1 %v4706_v54 }
 0xca6   :  { %v3035_v17 = vpop.f32.mrb[42].mxu0 }
 0xca7   :  { %4627 = vmatpush3.bf16.msra.mxu1 %v4626_v12  ;;  %v4222_v16 = vpop.f32.mrb[43].mxu0 }
 0xca8   :  { %4628 = vmatprep.subr.bf16.mxu1 %v4706_v54 }
 0xcab   :  { %4630 = vmatpush3.bf16.msra.mxu1 %v4629_v13 }
 0xcac   :  { %4631 = vmatprep.subr.bf16.mxu1 %v4706_v54 }
 0xcaf   :  { %4633 = vmatpush3.bf16.msra.mxu1 %v4632_v20 }
 0xcb0   :  { %4634 = vmatprep.subr.bf16.mxu1 %v4706_v54 }
 0xcb2   :  { %4216 = vmatmul.mubr.msk.f32.vlgmr.msra.gmra.mrb[22].mxu1 %vm197_vm1, %v2877_v10 }
 0xcb3   :  { %4636 = vmatpush3.bf16.msra.mxu1 %v4635_v23  ;;  %4239 = vmatprep.mubr.msk.f32.mxu1 %vm4707_vm2, %v4708_v33  ;;  %v3341_v33 = vld [vmem:[%s5751_s20 + $0xb8] sm:$0xff]  ;;  %s4710_s20 = smov [#allocation4]  }
 0xcb4   :  { %4637 = vmatprep.subr.bf16.mxu1 %v4706_v54  ;;  %v4644_v31 = vpack.c.bf16 %v3341_v33, %v3340_v30  ;;  %s3183_s21 = sshll.u32 %s4710_s20, 4  ;;  %s3184_s21 = int_to_ptr.vmem [resolvable:$true] %s3183_s21 }
 0xcb5   :  { %s4682_s18 = scalar_lea.vmem %s3184_s21, 128  ;;  %p4687_p1 = scmp.lt.s32.totalorder %s3184_s21, %s3184_s21 }
 0xcb6   :  { %p4683_p0 = scmp.ne.s32.totalorder %s3184_s21, %s4682_s18  ;;  %p4688_p2 = scmp.lt.s32.totalorder %s4682_s18, %s4682_s18 }
 0xcb7   :  { %4639 = vmatpush3.bf16.msra.mxu1 %v4638_v26 }
 0xcb8   :  { %4640 = vmatprep.subr.bf16.mxu1 %v4706_v54  ;;  %p4689_p3 = por %p4688_p2, %p4687_p1 }
 0xcba   :  { %p4690_p4 = pnand %p4689_p3, %p4683_p0 }
 0xcbb   :  { %4642 = vmatpush3.bf16.msra.mxu1 %v4641_v29 }
 0xcbc   :  { %4643 = vmatprep.subr.bf16.mxu1 %v4706_v54 }
 0xcbf   :  { %4645 = vmatpush3.bf16.msra.mxu1 %v4644_v31 }
 0xcc2   :  { %4240 = vmatmul.mubr.msk.f32.vlgmr.msra.gmra.mrb[22].mxu1 %vm197_vm1, %v3035_v17 }
 0xd95   :  { %v3117_v34 = vpop.f32.mrb[22].mxu1 }
 0xd96   :  { %v4656_v35 = vadd.f32 %v3320_v32, %v3117_v34  ;;  %v4241_v36 = vpop.f32.mrb[23].mxu1 }
 0xd98   :  { %v3125_v37 = vsel %vm3124_vm5, %v4656_v35, 0.0  ;;  %v3132_v39 = vmul.f32 %v4656_v35, %v4656_v35 }
 0xd99   :  { %v3126_v41 = vrot.slane %v3125_v37, 4 }
 0xd9a   :  { %v3133_v42 = vsel %vm3124_vm5, %v3132_v39, 0.0 }
 0xd9b   :  { %v3134_v44 = vrot.slane %v3133_v42, 4  ;;  %v3127_v45 = vadd.f32 %v3126_v41, %v3125_v37 }
 0xd9d   :  { %v3128_v54 = vrot.slane %v3127_v45, 2  ;;  %v3135_v47 = vadd.f32 %v3134_v44, %v3133_v42 }
 0xd9f   :  { %v3129_v48 = vadd.f32 %v3128_v54, %v3127_v45  ;;  %v3136_v50 = vrot.slane %v3135_v47, 2 }
 0xda1   :  { %v3130_v51 = vrot.slane %v3129_v48, 1  ;;  %v3137_v52 = vadd.f32 %v3136_v50, %v3135_v47 }
 0xda3   :  { %v3131_v53 = vadd.f32 %v3130_v51, %v3129_v48  ;;  %v3138_v55 = vrot.slane %v3137_v52, 1 }
 0xda5   :  { %v3140_v56 = vsel %vm3124_vm5, %v3131_v53, 0.0  ;;  %v3139_v57 = vadd.f32 %v3138_v55, %v3137_v52 }
 0xda6   :  { %3141 = vadd.xlane.f32.xlu0 %v3140_v56 }
 0xda7   :  { %v3143_v58 = vsel %vm3124_vm5, %v3139_v57, 0.0 }
 0xdaa   :  { %3144 = vadd.xlane.f32.xlu0 %v3143_v58 }
 0xe33   :  { %v3142_v60 = vpop.xlane.xlu0 %3141 }
 0xe34   :  { %v3146_v61 = vmul.f32 0.03125, %v3142_v60 }
 0xe36   :  { %v3148_v63 = vmul.f32 %v3146_v61, %v3146_v61 }
 0xe37   :  { %v3145_v62 = vpop.xlane.xlu0 %3144 }
 0xe38   :  { %v3147_v0 = vmul.f32 0.03125, %v3145_v62 }
 0xe3a   :  { %v3149_v1 = vsub.f32 %v3147_v0, %v3148_v63 }
 0xe3c   :  { %v3150_v40 = vadd.f32 1e-05, %v3149_v1 }
 0xe3e   :  { %4680 = vrsqrt.f32 %v3150_v40 }
 0xe48   :  { %v4681_v49 = vpop.eup %4680 }
 0xe49   :  { %v3152_v3 = vmul.f32 %v4681_v49, %v3122_v38 }
 0xe4b   :  { %v3159_v5 = vrot.slane %v3152_v3, %v5156_v43  ;;  %v3153_v6 = vmul.f32 %v3152_v3, %v3146_v61 }
 0xe4d   :  { %3161 = vperm.xlu1 %4674, %v3159_v5   ;;  %v3154_v7 = vsub.f32 %v3123_v4, %v3153_v6 }
 0xe4f   :  { %v3169_v8 = vrot.slane %v3154_v7, %v5156_v43 }
 0xe51   :  { %3171 = vperm.xlu1 %4674, %v3169_v8  }
 0xecc   :  { %v3162_v9 = vpop.permute.xlu1 %3161 }
 0xecd   :  { %v3164_v2 = vmul.f32 %v4656_v35, %v3162_v9 }
 0xed0   :  { %v3172_v46 = vpop.permute.xlu1 %3171 }
 0xed1   :  { %v3174_v10 = vadd.f32 %v3172_v46, %v3164_v2 }
 0xed3   :  { %v3175_v12 = vmax.f32 %v3174_v10, 0.0 }
 0xed5   :  { %3176 = vst.msk [vmem:[#allocation4] sm:$0xff] %vm3124_vm5, %v3175_v12 }
 0xed6   :  { %4693 = shalt.err (!%p4690_p4)
}
 0xed7   :  { %s4694_s15 = scalar_lea.hbm %s5754_s24, 128 }
 0xed8   :  { %p4695_p5 = scmp.ne.s32.totalorder %s5754_s24, %s4694_s15  ;;  %p4698_p6 = scmp.lt.u32.totalorder %s4694_s15, %s5754_s24 }
 0xeda   :  { %p4700_p7 = pnand %p4698_p6, %p4695_p5 }
 0xedc   :  { %4703 = shalt.err (!%p4700_p7)
}
 0xedd   :  { %3186 = dma.vmem_to_hbm [thread:$0]  %s3184_s21, 128, %s5754_s24, [#allocation5]  }
 0xede   :  { %4704 = dma.done.wait [#allocation5], 128  }
 0xedf   :  { %4705 = vsyncadd [#allocation5], 4294967168 }
 0xee0   :  { %3190 = vsyncpa [#allocation5], 1 }

</bundles_post_ra>
